<compile_context>
chip_gen: v7x
topology: tpu7x:2x2x1
jax: 0.10.0
libtpu: 0.0.40
codegen_flags: <defaults>
</compile_context>

<pallas_src>
import functools

import numpy as np
import jax
import jax.numpy as jnp
from jax.experimental import pallas as pl
from jax.experimental.pallas import tpu as pltpu

LEAKY_SLOPE = 0.2
BN_EPS = 1e-5
PAD = 128  # lane width everything is padded to (largest hidden dim == 128)


def make_layer_dims(input_dim):
    # encoder: in->128->64->32->16->8->4, decoder: 4->8->16->32->64->128->in
    enc = [input_dim, 128, 64, 32, 16, 8, 4]
    dec = [4, 8, 16, 32, 64, 128, input_dim]
    dims = list(zip(enc[:-1], enc[1:])) + list(zip(dec[:-1], dec[1:]))
    # LeakyReLU(0.2) + BatchNorm1d follow every Linear except the last of
    # encoder and decoder.
    has_bn = [True] * 5 + [False] + [True] * 5 + [False]
    return dims, has_bn


def init_params(input_dim, key):
    """Per-layer params in natural shapes (W:(in,out), b/gamma/beta:(out,))."""
    dims, has_bn = make_layer_dims(input_dim)
    layers = []
    for (fan_in, fan_out), flag in zip(dims, has_bn):
        key, kw, kb, kg, kbe = jax.random.split(key, 5)
        bound = 1.0 / np.sqrt(fan_in)
        w = jax.random.uniform(kw, (fan_in, fan_out), jnp.float32, -bound, bound)
        b = jax.random.uniform(kb, (fan_out,), jnp.float32, -bound, bound)
        if flag:
            gamma = 1.0 + 0.1 * jax.random.normal(kg, (fan_out,), jnp.float32)
            beta = 0.1 * jax.random.normal(kbe, (fan_out,), jnp.float32)
        else:
            gamma = beta = None
        layers.append((w, b, gamma, beta))
    return layers, dims, has_bn


def pack_params(layers, dims, has_bn):
    """Pack all params into one bf16 weight slab + one f32 vector-row slab."""
    n_layers = len(dims)
    w_slab = np.zeros((n_layers, PAD, PAD), np.float32)
    vec_rows = []
    plan = []
    for l, ((fan_in, fan_out), flag) in enumerate(zip(dims, has_bn)):
        w, b, gamma, beta = layers[l]
        w_slab[l, :fan_in, :fan_out] = np.asarray(w, np.float32)

        def add_row(v):
            row = np.zeros((PAD,), np.float32)
            row[:fan_out] = np.asarray(v, np.float32)
            vec_rows.append(row)
            return len(vec_rows) - 1

        b_row = add_row(b)
        if flag:
            plan.append((b_row, (add_row(gamma), add_row(beta))))
        else:
            plan.append((b_row, None))

    n_rows = len(vec_rows)
    n_rows_padded = -(-n_rows // 8) * 8  # sublane-align
    v_slab = np.zeros((n_rows_padded, PAD), np.float32)
    v_slab[:n_rows] = np.stack(vec_rows)
    return (jnp.asarray(w_slab, dtype=jnp.bfloat16),
            jnp.asarray(v_slab, dtype=jnp.float32),
            tuple(plan))


def autoencoder_kernel(plan, batch, x_ref, w_ref, v_ref, out_ref):
    # x_ref:   (B, 128)        f32, zero-padded input
    # w_ref:   (12, 128, 128)  bf16 packed weights
    # v_ref:   (Vrows, 128)    f32 packed bias/gamma/beta rows
    # out_ref: (B, 128)        f32 (lane-dense, unmasked store)
    inv_b = 1.0 / float(batch)
    vecs = v_ref[...]          # single load of all vector params
    h = x_ref[...]             # f32
    for l, (b_row, bn_rows) in enumerate(plan):
        w = w_ref[l]                                  # (128,128) bf16, static
        b = vecs[b_row:b_row + 1, :]                  # (1,128) f32
        # Linear on the MXU: bf16 operands, f32 accumulation.
        h = jnp.dot(h.astype(jnp.bfloat16), w,
                    preferred_element_type=jnp.float32) + b
        if bn_rows is not None:
            g_row, be_row = bn_rows
            # LeakyReLU(0.2): single VPU max.
            h = jnp.maximum(h, LEAKY_SLOPE * h)
            # BatchNorm1d (training mode: batch mean, biased variance).
            # One-pass stats + fused affine, all in f32.
            mean = jnp.sum(h, axis=0, keepdims=True) * inv_b
            mean_sq = jnp.sum(h * h, axis=0, keepdims=True) * inv_b
            var = jnp.maximum(mean_sq - mean * mean, 0.0)
            scale = vecs[g_row:g_row + 1, :] * jax.lax.rsqrt(var + BN_EPS)
            shift = vecs[be_row:be_row + 1, :] - mean * scale
            h = h * scale + shift
    out_ref[...] = h.astype(out_ref.dtype)


def deep_autoencoder_forward(x, w_slab, v_slab, plan, input_dim):
    """x: (B, input_dim) f32 -> (B, input_dim) f32."""
    B = x.shape[0]
    # Pad input lanes to 128 (zeros stay zero through every padded layer).
    x_pad = jnp.zeros((B, PAD), jnp.float32).at[:, :input_dim].set(x)
    kernel = functools.partial(autoencoder_kernel, plan, B)
    vmem = pl.BlockSpec(memory_space=pltpu.MemorySpace.VMEM)
    out_pad = pl.pallas_call(
        kernel,
        out_shape=jax.ShapeDtypeStruct((B, PAD), jnp.float32),
        in_specs=[vmem, vmem, vmem],
        out_specs=vmem,
    )(x_pad, w_slab, v_slab)
    return out_pad[:, :input_dim]


def reference_forward(x, layers, has_bn, matmul_dtype=jnp.float32):
    """Pure-JAX reference. matmul_dtype=bf16 mirrors the kernel's MXU numerics;
    matmul_dtype=f32 matches the original PyTorch module exactly."""
    h = x
    for (w, b, gamma, beta), flag in zip(layers, has_bn):
        h = jnp.dot(h.astype(matmul_dtype), w.astype(matmul_dtype),
                    preferred_element_type=jnp.float32) + b
        if flag:
            h = jnp.where(h >= 0.0, h, LEAKY_SLOPE * h)
            mean = jnp.mean(h, axis=0, keepdims=True)
            var = jnp.mean((h - mean) ** 2, axis=0, keepdims=True)
            h = (h - mean) * jax.lax.rsqrt(var + BN_EPS) * gamma + beta
    return h


if __name__ == "__main__":
    INPUT_DIM = 32
    BATCH = 8

    key = jax.random.PRNGKey(0)
    key, kx = jax.random.split(key)
    x = jax.random.normal(kx, (BATCH, INPUT_DIM), jnp.float32)

    layers, dims, has_bn = init_params(INPUT_DIM, key)
    w_slab, v_slab, plan = pack_params(layers, dims, has_bn)

    out = deep_autoencoder_forward(x, w_slab, v_slab, plan, INPUT_DIM)
    out = jax.block_until_ready(out)

    assert out.shape == (BATCH, INPUT_DIM)
    assert bool(jnp.all(jnp.isfinite(out)))

    # Tight check vs. a reference that mirrors the kernel's bf16-matmul /
    # f32-everything-else numerics (validates the kernel implementation).
    ref_bf16 = reference_forward(x, layers, has_bn, matmul_dtype=jnp.bfloat16)
    assert jnp.allclose(out, ref_bf16, rtol=1e-2, atol=1e-2), \
        float(jnp.max(jnp.abs(out - ref_bf16)))

    # Loose sanity check vs. the full-f32 (PyTorch-semantics) reference; the
    # only deliberate difference is bf16 MXU operands.
    ref_f32 = reference_forward(x, layers, has_bn, matmul_dtype=jnp.float32)
    assert jnp.allclose(out, ref_f32, rtol=0.15, atol=0.15), \
        float(jnp.max(jnp.abs(out - ref_f32)))

    print("KERNEL_OK")
</pallas_src>

<mosaic_0001>
module attributes {stable_mosaic.version = 11 : i64} {
  func.func @autoencoder_kernel(%arg0: memref<8x128xf32, #tpu.memory_space<vmem>>, %arg1: memref<12x128x128xbf16, #tpu.memory_space<vmem>>, %arg2: memref<32x128xf32, #tpu.memory_space<vmem>>, %arg3: memref<8x128xf32, #tpu.memory_space<vmem>>) attributes {dimension_semantics = [], scalar_prefetch = 0 : i64, scratch_operands = 0 : i64, tpu.core_type = #tpu.core_type<tc>} {
    %c0 = arith.constant 0 : index
    %c0_0 = arith.constant 0 : index
    %0 = vector.load %arg2[%c0, %c0_0] : memref<32x128xf32, #tpu.memory_space<vmem>>, vector<32x128xf32>
    %c0_1 = arith.constant 0 : index
    %c0_2 = arith.constant 0 : index
    %1 = vector.load %arg0[%c0_1, %c0_2] : memref<8x128xf32, #tpu.memory_space<vmem>>, vector<8x128xf32>
    %c0_3 = arith.constant 0 : index
    %c0_4 = arith.constant 0 : index
    %c0_5 = arith.constant 0 : index
    %2 = vector.load %arg1[%c0_3, %c0_4, %c0_5] : memref<12x128x128xbf16, #tpu.memory_space<vmem>>, vector<1x128x128xbf16>
    %3 = vector.shape_cast %2 : vector<1x128x128xbf16> to vector<128x128xbf16>
    %4 = vector.extract_strided_slice %0 {offsets = [0, 0], sizes = [1, 128], strides = [1, 1]} : vector<32x128xf32> to vector<1x128xf32>
    %5 = arith.truncf %1 : vector<8x128xf32> to vector<8x128xbf16>
    %cst = arith.constant dense<0.000000e+00> : vector<8x128xf32>
    %6 = tpu.matmul %5, %3, %cst {dimension_numbers = #tpu.dot_dimension_numbers<[1], [0], [0], [1], [0, 0, 1, 1], [], []>} : vector<8x128xbf16>, vector<128x128xbf16>, vector<8x128xf32> -> vector<8x128xf32>
    %7 = vector.broadcast %4 : vector<1x128xf32> to vector<8x128xf32>
    %8 = arith.addf %6, %7 : vector<8x128xf32>
    %cst_6 = arith.constant 2.000000e-01 : f32
    %9 = vector.broadcast %cst_6 : f32 to vector<8x128xf32>
    %10 = arith.mulf %9, %8 : vector<8x128xf32>
    %11 = arith.maximumf %8, %10 : vector<8x128xf32>
    %cst_7 = arith.constant dense<0.000000e+00> : vector<128xf32>
    %12 = vector.multi_reduction <add>, %11, %cst_7 [0] : vector<8x128xf32> to vector<128xf32>
    %13 = vector.shape_cast %12 : vector<128xf32> to vector<1x128xf32>
    %cst_8 = arith.constant 1.250000e-01 : f32
    %14 = vector.broadcast %cst_8 : f32 to vector<1x128xf32>
    %15 = arith.mulf %13, %14 : vector<1x128xf32>
    %16 = arith.mulf %11, %11 : vector<8x128xf32>
    %cst_9 = arith.constant dense<0.000000e+00> : vector<128xf32>
    %17 = vector.multi_reduction <add>, %16, %cst_9 [0] : vector<8x128xf32> to vector<128xf32>
    %18 = vector.shape_cast %17 : vector<128xf32> to vector<1x128xf32>
    %cst_10 = arith.constant 1.250000e-01 : f32
    %19 = vector.broadcast %cst_10 : f32 to vector<1x128xf32>
    %20 = arith.mulf %18, %19 : vector<1x128xf32>
    %21 = arith.mulf %15, %15 : vector<1x128xf32>
    %22 = arith.subf %20, %21 : vector<1x128xf32>
    %cst_11 = arith.constant 0.000000e+00 : f32
    %23 = vector.broadcast %cst_11 : f32 to vector<1x128xf32>
    %24 = arith.maximumf %22, %23 : vector<1x128xf32>
    %25 = vector.extract_strided_slice %0 {offsets = [1, 0], sizes = [1, 128], strides = [1, 1]} : vector<32x128xf32> to vector<1x128xf32>
    %cst_12 = arith.constant 9.99999974E-6 : f32
    %26 = vector.broadcast %cst_12 : f32 to vector<1x128xf32>
    %27 = arith.addf %24, %26 : vector<1x128xf32>
    %28 = math.rsqrt %27 : vector<1x128xf32>
    %29 = arith.mulf %25, %28 : vector<1x128xf32>
    %30 = vector.extract_strided_slice %0 {offsets = [2, 0], sizes = [1, 128], strides = [1, 1]} : vector<32x128xf32> to vector<1x128xf32>
    %31 = arith.mulf %15, %29 : vector<1x128xf32>
    %32 = arith.subf %30, %31 : vector<1x128xf32>
    %33 = vector.broadcast %29 : vector<1x128xf32> to vector<8x128xf32>
    %34 = arith.mulf %11, %33 : vector<8x128xf32>
    %35 = vector.broadcast %32 : vector<1x128xf32> to vector<8x128xf32>
    %36 = arith.addf %34, %35 : vector<8x128xf32>
    %c1 = arith.constant 1 : index
    %c0_13 = arith.constant 0 : index
    %c0_14 = arith.constant 0 : index
    %37 = vector.load %arg1[%c1, %c0_13, %c0_14] : memref<12x128x128xbf16, #tpu.memory_space<vmem>>, vector<1x128x128xbf16>
    %38 = vector.shape_cast %37 : vector<1x128x128xbf16> to vector<128x128xbf16>
    %39 = vector.extract_strided_slice %0 {offsets = [3, 0], sizes = [1, 128], strides = [1, 1]} : vector<32x128xf32> to vector<1x128xf32>
    %40 = arith.truncf %36 : vector<8x128xf32> to vector<8x128xbf16>
    %cst_15 = arith.constant dense<0.000000e+00> : vector<8x128xf32>
    %41 = tpu.matmul %40, %38, %cst_15 {dimension_numbers = #tpu.dot_dimension_numbers<[1], [0], [0], [1], [0, 0, 1, 1], [], []>} : vector<8x128xbf16>, vector<128x128xbf16>, vector<8x128xf32> -> vector<8x128xf32>
    %42 = vector.broadcast %39 : vector<1x128xf32> to vector<8x128xf32>
    %43 = arith.addf %41, %42 : vector<8x128xf32>
    %cst_16 = arith.constant 2.000000e-01 : f32
    %44 = vector.broadcast %cst_16 : f32 to vector<8x128xf32>
    %45 = arith.mulf %44, %43 : vector<8x128xf32>
    %46 = arith.maximumf %43, %45 : vector<8x128xf32>
    %cst_17 = arith.constant dense<0.000000e+00> : vector<128xf32>
    %47 = vector.multi_reduction <add>, %46, %cst_17 [0] : vector<8x128xf32> to vector<128xf32>
    %48 = vector.shape_cast %47 : vector<128xf32> to vector<1x128xf32>
    %cst_18 = arith.constant 1.250000e-01 : f32
    %49 = vector.broadcast %cst_18 : f32 to vector<1x128xf32>
    %50 = arith.mulf %48, %49 : vector<1x128xf32>
    %51 = arith.mulf %46, %46 : vector<8x128xf32>
    %cst_19 = arith.constant dense<0.000000e+00> : vector<128xf32>
    %52 = vector.multi_reduction <add>, %51, %cst_19 [0] : vector<8x128xf32> to vector<128xf32>
    %53 = vector.shape_cast %52 : vector<128xf32> to vector<1x128xf32>
    %cst_20 = arith.constant 1.250000e-01 : f32
    %54 = vector.broadcast %cst_20 : f32 to vector<1x128xf32>
    %55 = arith.mulf %53, %54 : vector<1x128xf32>
    %56 = arith.mulf %50, %50 : vector<1x128xf32>
    %57 = arith.subf %55, %56 : vector<1x128xf32>
    %cst_21 = arith.constant 0.000000e+00 : f32
    %58 = vector.broadcast %cst_21 : f32 to vector<1x128xf32>
    %59 = arith.maximumf %57, %58 : vector<1x128xf32>
    %60 = vector.extract_strided_slice %0 {offsets = [4, 0], sizes = [1, 128], strides = [1, 1]} : vector<32x128xf32> to vector<1x128xf32>
    %cst_22 = arith.constant 9.99999974E-6 : f32
    %61 = vector.broadcast %cst_22 : f32 to vector<1x128xf32>
    %62 = arith.addf %59, %61 : vector<1x128xf32>
    %63 = math.rsqrt %62 : vector<1x128xf32>
    %64 = arith.mulf %60, %63 : vector<1x128xf32>
    %65 = vector.extract_strided_slice %0 {offsets = [5, 0], sizes = [1, 128], strides = [1, 1]} : vector<32x128xf32> to vector<1x128xf32>
    %66 = arith.mulf %50, %64 : vector<1x128xf32>
    %67 = arith.subf %65, %66 : vector<1x128xf32>
    %68 = vector.broadcast %64 : vector<1x128xf32> to vector<8x128xf32>
    %69 = arith.mulf %46, %68 : vector<8x128xf32>
    %70 = vector.broadcast %67 : vector<1x128xf32> to vector<8x128xf32>
    %71 = arith.addf %69, %70 : vector<8x128xf32>
    %c2 = arith.constant 2 : index
    %c0_23 = arith.constant 0 : index
    %c0_24 = arith.constant 0 : index
    %72 = vector.load %arg1[%c2, %c0_23, %c0_24] : memref<12x128x128xbf16, #tpu.memory_space<vmem>>, vector<1x128x128xbf16>
    %73 = vector.shape_cast %72 : vector<1x128x128xbf16> to vector<128x128xbf16>
    %74 = vector.extract_strided_slice %0 {offsets = [6, 0], sizes = [1, 128], strides = [1, 1]} : vector<32x128xf32> to vector<1x128xf32>
    %75 = arith.truncf %71 : vector<8x128xf32> to vector<8x128xbf16>
    %cst_25 = arith.constant dense<0.000000e+00> : vector<8x128xf32>
    %76 = tpu.matmul %75, %73, %cst_25 {dimension_numbers = #tpu.dot_dimension_numbers<[1], [0], [0], [1], [0, 0, 1, 1], [], []>} : vector<8x128xbf16>, vector<128x128xbf16>, vector<8x128xf32> -> vector<8x128xf32>
    %77 = vector.broadcast %74 : vector<1x128xf32> to vector<8x128xf32>
    %78 = arith.addf %76, %77 : vector<8x128xf32>
    %cst_26 = arith.constant 2.000000e-01 : f32
    %79 = vector.broadcast %cst_26 : f32 to vector<8x128xf32>
    %80 = arith.mulf %79, %78 : vector<8x128xf32>
    %81 = arith.maximumf %78, %80 : vector<8x128xf32>
    %cst_27 = arith.constant dense<0.000000e+00> : vector<128xf32>
    %82 = vector.multi_reduction <add>, %81, %cst_27 [0] : vector<8x128xf32> to vector<128xf32>
    %83 = vector.shape_cast %82 : vector<128xf32> to vector<1x128xf32>
    %cst_28 = arith.constant 1.250000e-01 : f32
    %84 = vector.broadcast %cst_28 : f32 to vector<1x128xf32>
    %85 = arith.mulf %83, %84 : vector<1x128xf32>
    %86 = arith.mulf %81, %81 : vector<8x128xf32>
    %cst_29 = arith.constant dense<0.000000e+00> : vector<128xf32>
    %87 = vector.multi_reduction <add>, %86, %cst_29 [0] : vector<8x128xf32> to vector<128xf32>
    %88 = vector.shape_cast %87 : vector<128xf32> to vector<1x128xf32>
    %cst_30 = arith.constant 1.250000e-01 : f32
    %89 = vector.broadcast %cst_30 : f32 to vector<1x128xf32>
    %90 = arith.mulf %88, %89 : vector<1x128xf32>
    %91 = arith.mulf %85, %85 : vector<1x128xf32>
    %92 = arith.subf %90, %91 : vector<1x128xf32>
    %cst_31 = arith.constant 0.000000e+00 : f32
    %93 = vector.broadcast %cst_31 : f32 to vector<1x128xf32>
    %94 = arith.maximumf %92, %93 : vector<1x128xf32>
    %95 = vector.extract_strided_slice %0 {offsets = [7, 0], sizes = [1, 128], strides = [1, 1]} : vector<32x128xf32> to vector<1x128xf32>
    %cst_32 = arith.constant 9.99999974E-6 : f32
    %96 = vector.broadcast %cst_32 : f32 to vector<1x128xf32>
    %97 = arith.addf %94, %96 : vector<1x128xf32>
    %98 = math.rsqrt %97 : vector<1x128xf32>
    %99 = arith.mulf %95, %98 : vector<1x128xf32>
    %100 = vector.extract_strided_slice %0 {offsets = [8, 0], sizes = [1, 128], strides = [1, 1]} : vector<32x128xf32> to vector<1x128xf32>
    %101 = arith.mulf %85, %99 : vector<1x128xf32>
    %102 = arith.subf %100, %101 : vector<1x128xf32>
    %103 = vector.broadcast %99 : vector<1x128xf32> to vector<8x128xf32>
    %104 = arith.mulf %81, %103 : vector<8x128xf32>
    %105 = vector.broadcast %102 : vector<1x128xf32> to vector<8x128xf32>
    %106 = arith.addf %104, %105 : vector<8x128xf32>
    %c3 = arith.constant 3 : index
    %c0_33 = arith.constant 0 : index
    %c0_34 = arith.constant 0 : index
    %107 = vector.load %arg1[%c3, %c0_33, %c0_34] : memref<12x128x128xbf16, #tpu.memory_space<vmem>>, vector<1x128x128xbf16>
    %108 = vector.shape_cast %107 : vector<1x128x128xbf16> to vector<128x128xbf16>
    %109 = vector.extract_strided_slice %0 {offsets = [9, 0], sizes = [1, 128], strides = [1, 1]} : vector<32x128xf32> to vector<1x128xf32>
    %110 = arith.truncf %106 : vector<8x128xf32> to vector<8x128xbf16>
    %cst_35 = arith.constant dense<0.000000e+00> : vector<8x128xf32>
    %111 = tpu.matmul %110, %108, %cst_35 {dimension_numbers = #tpu.dot_dimension_numbers<[1], [0], [0], [1], [0, 0, 1, 1], [], []>} : vector<8x128xbf16>, vector<128x128xbf16>, vector<8x128xf32> -> vector<8x128xf32>
    %112 = vector.broadcast %109 : vector<1x128xf32> to vector<8x128xf32>
    %113 = arith.addf %111, %112 : vector<8x128xf32>
    %cst_36 = arith.constant 2.000000e-01 : f32
    %114 = vector.broadcast %cst_36 : f32 to vector<8x128xf32>
    %115 = arith.mulf %114, %113 : vector<8x128xf32>
    %116 = arith.maximumf %113, %115 : vector<8x128xf32>
    %cst_37 = arith.constant dense<0.000000e+00> : vector<128xf32>
    %117 = vector.multi_reduction <add>, %116, %cst_37 [0] : vector<8x128xf32> to vector<128xf32>
    %118 = vector.shape_cast %117 : vector<128xf32> to vector<1x128xf32>
    %cst_38 = arith.constant 1.250000e-01 : f32
    %119 = vector.broadcast %cst_38 : f32 to vector<1x128xf32>
    %120 = arith.mulf %118, %119 : vector<1x128xf32>
    %121 = arith.mulf %116, %116 : vector<8x128xf32>
    %cst_39 = arith.constant dense<0.000000e+00> : vector<128xf32>
    %122 = vector.multi_reduction <add>, %121, %cst_39 [0] : vector<8x128xf32> to vector<128xf32>
    %123 = vector.shape_cast %122 : vector<128xf32> to vector<1x128xf32>
    %cst_40 = arith.constant 1.250000e-01 : f32
    %124 = vector.broadcast %cst_40 : f32 to vector<1x128xf32>
    %125 = arith.mulf %123, %124 : vector<1x128xf32>
    %126 = arith.mulf %120, %120 : vector<1x128xf32>
    %127 = arith.subf %125, %126 : vector<1x128xf32>
    %cst_41 = arith.constant 0.000000e+00 : f32
    %128 = vector.broadcast %cst_41 : f32 to vector<1x128xf32>
    %129 = arith.maximumf %127, %128 : vector<1x128xf32>
    %130 = vector.extract_strided_slice %0 {offsets = [10, 0], sizes = [1, 128], strides = [1, 1]} : vector<32x128xf32> to vector<1x128xf32>
    %cst_42 = arith.constant 9.99999974E-6 : f32
    %131 = vector.broadcast %cst_42 : f32 to vector<1x128xf32>
    %132 = arith.addf %129, %131 : vector<1x128xf32>
    %133 = math.rsqrt %132 : vector<1x128xf32>
    %134 = arith.mulf %130, %133 : vector<1x128xf32>
    %135 = vector.extract_strided_slice %0 {offsets = [11, 0], sizes = [1, 128], strides = [1, 1]} : vector<32x128xf32> to vector<1x128xf32>
    %136 = arith.mulf %120, %134 : vector<1x128xf32>
    %137 = arith.subf %135, %136 : vector<1x128xf32>
    %138 = vector.broadcast %134 : vector<1x128xf32> to vector<8x128xf32>
    %139 = arith.mulf %116, %138 : vector<8x128xf32>
    %140 = vector.broadcast %137 : vector<1x128xf32> to vector<8x128xf32>
    %141 = arith.addf %139, %140 : vector<8x128xf32>
    %c4 = arith.constant 4 : index
    %c0_43 = arith.constant 0 : index
    %c0_44 = arith.constant 0 : index
    %142 = vector.load %arg1[%c4, %c0_43, %c0_44] : memref<12x128x128xbf16, #tpu.memory_space<vmem>>, vector<1x128x128xbf16>
    %143 = vector.shape_cast %142 : vector<1x128x128xbf16> to vector<128x128xbf16>
    %144 = vector.extract_strided_slice %0 {offsets = [12, 0], sizes = [1, 128], strides = [1, 1]} : vector<32x128xf32> to vector<1x128xf32>
    %145 = arith.truncf %141 : vector<8x128xf32> to vector<8x128xbf16>
    %cst_45 = arith.constant dense<0.000000e+00> : vector<8x128xf32>
    %146 = tpu.matmul %145, %143, %cst_45 {dimension_numbers = #tpu.dot_dimension_numbers<[1], [0], [0], [1], [0, 0, 1, 1], [], []>} : vector<8x128xbf16>, vector<128x128xbf16>, vector<8x128xf32> -> vector<8x128xf32>
    %147 = vector.broadcast %144 : vector<1x128xf32> to vector<8x128xf32>
    %148 = arith.addf %146, %147 : vector<8x128xf32>
    %cst_46 = arith.constant 2.000000e-01 : f32
    %149 = vector.broadcast %cst_46 : f32 to vector<8x128xf32>
    %150 = arith.mulf %149, %148 : vector<8x128xf32>
    %151 = arith.maximumf %148, %150 : vector<8x128xf32>
    %cst_47 = arith.constant dense<0.000000e+00> : vector<128xf32>
    %152 = vector.multi_reduction <add>, %151, %cst_47 [0] : vector<8x128xf32> to vector<128xf32>
    %153 = vector.shape_cast %152 : vector<128xf32> to vector<1x128xf32>
    %cst_48 = arith.constant 1.250000e-01 : f32
    %154 = vector.broadcast %cst_48 : f32 to vector<1x128xf32>
    %155 = arith.mulf %153, %154 : vector<1x128xf32>
    %156 = arith.mulf %151, %151 : vector<8x128xf32>
    %cst_49 = arith.constant dense<0.000000e+00> : vector<128xf32>
    %157 = vector.multi_reduction <add>, %156, %cst_49 [0] : vector<8x128xf32> to vector<128xf32>
    %158 = vector.shape_cast %157 : vector<128xf32> to vector<1x128xf32>
    %cst_50 = arith.constant 1.250000e-01 : f32
    %159 = vector.broadcast %cst_50 : f32 to vector<1x128xf32>
    %160 = arith.mulf %158, %159 : vector<1x128xf32>
    %161 = arith.mulf %155, %155 : vector<1x128xf32>
    %162 = arith.subf %160, %161 : vector<1x128xf32>
    %cst_51 = arith.constant 0.000000e+00 : f32
    %163 = vector.broadcast %cst_51 : f32 to vector<1x128xf32>
    %164 = arith.maximumf %162, %163 : vector<1x128xf32>
    %165 = vector.extract_strided_slice %0 {offsets = [13, 0], sizes = [1, 128], strides = [1, 1]} : vector<32x128xf32> to vector<1x128xf32>
    %cst_52 = arith.constant 9.99999974E-6 : f32
    %166 = vector.broadcast %cst_52 : f32 to vector<1x128xf32>
    %167 = arith.addf %164, %166 : vector<1x128xf32>
    %168 = math.rsqrt %167 : vector<1x128xf32>
    %169 = arith.mulf %165, %168 : vector<1x128xf32>
    %170 = vector.extract_strided_slice %0 {offsets = [14, 0], sizes = [1, 128], strides = [1, 1]} : vector<32x128xf32> to vector<1x128xf32>
    %171 = arith.mulf %155, %169 : vector<1x128xf32>
    %172 = arith.subf %170, %171 : vector<1x128xf32>
    %173 = vector.broadcast %169 : vector<1x128xf32> to vector<8x128xf32>
    %174 = arith.mulf %151, %173 : vector<8x128xf32>
    %175 = vector.broadcast %172 : vector<1x128xf32> to vector<8x128xf32>
    %176 = arith.addf %174, %175 : vector<8x128xf32>
    %c5 = arith.constant 5 : index
    %c0_53 = arith.constant 0 : index
    %c0_54 = arith.constant 0 : index
    %177 = vector.load %arg1[%c5, %c0_53, %c0_54] : memref<12x128x128xbf16, #tpu.memory_space<vmem>>, vector<1x128x128xbf16>
    %178 = vector.shape_cast %177 : vector<1x128x128xbf16> to vector<128x128xbf16>
    %179 = vector.extract_strided_slice %0 {offsets = [15, 0], sizes = [1, 128], strides = [1, 1]} : vector<32x128xf32> to vector<1x128xf32>
    %180 = arith.truncf %176 : vector<8x128xf32> to vector<8x128xbf16>
    %cst_55 = arith.constant dense<0.000000e+00> : vector<8x128xf32>
    %181 = tpu.matmul %180, %178, %cst_55 {dimension_numbers = #tpu.dot_dimension_numbers<[1], [0], [0], [1], [0, 0, 1, 1], [], []>} : vector<8x128xbf16>, vector<128x128xbf16>, vector<8x128xf32> -> vector<8x128xf32>
    %182 = vector.broadcast %179 : vector<1x128xf32> to vector<8x128xf32>
    %183 = arith.addf %181, %182 : vector<8x128xf32>
    %c6 = arith.constant 6 : index
    %c0_56 = arith.constant 0 : index
    %c0_57 = arith.constant 0 : index
    %184 = vector.load %arg1[%c6, %c0_56, %c0_57] : memref<12x128x128xbf16, #tpu.memory_space<vmem>>, vector<1x128x128xbf16>
    %185 = vector.shape_cast %184 : vector<1x128x128xbf16> to vector<128x128xbf16>
    %186 = vector.extract_strided_slice %0 {offsets = [16, 0], sizes = [1, 128], strides = [1, 1]} : vector<32x128xf32> to vector<1x128xf32>
    %187 = arith.truncf %183 : vector<8x128xf32> to vector<8x128xbf16>
    %cst_58 = arith.constant dense<0.000000e+00> : vector<8x128xf32>
    %188 = tpu.matmul %187, %185, %cst_58 {dimension_numbers = #tpu.dot_dimension_numbers<[1], [0], [0], [1], [0, 0, 1, 1], [], []>} : vector<8x128xbf16>, vector<128x128xbf16>, vector<8x128xf32> -> vector<8x128xf32>
    %189 = vector.broadcast %186 : vector<1x128xf32> to vector<8x128xf32>
    %190 = arith.addf %188, %189 : vector<8x128xf32>
    %cst_59 = arith.constant 2.000000e-01 : f32
    %191 = vector.broadcast %cst_59 : f32 to vector<8x128xf32>
    %192 = arith.mulf %191, %190 : vector<8x128xf32>
    %193 = arith.maximumf %190, %192 : vector<8x128xf32>
    %cst_60 = arith.constant dense<0.000000e+00> : vector<128xf32>
    %194 = vector.multi_reduction <add>, %193, %cst_60 [0] : vector<8x128xf32> to vector<128xf32>
    %195 = vector.shape_cast %194 : vector<128xf32> to vector<1x128xf32>
    %cst_61 = arith.constant 1.250000e-01 : f32
    %196 = vector.broadcast %cst_61 : f32 to vector<1x128xf32>
    %197 = arith.mulf %195, %196 : vector<1x128xf32>
    %198 = arith.mulf %193, %193 : vector<8x128xf32>
    %cst_62 = arith.constant dense<0.000000e+00> : vector<128xf32>
    %199 = vector.multi_reduction <add>, %198, %cst_62 [0] : vector<8x128xf32> to vector<128xf32>
    %200 = vector.shape_cast %199 : vector<128xf32> to vector<1x128xf32>
    %cst_63 = arith.constant 1.250000e-01 : f32
    %201 = vector.broadcast %cst_63 : f32 to vector<1x128xf32>
    %202 = arith.mulf %200, %201 : vector<1x128xf32>
    %203 = arith.mulf %197, %197 : vector<1x128xf32>
    %204 = arith.subf %202, %203 : vector<1x128xf32>
    %cst_64 = arith.constant 0.000000e+00 : f32
    %205 = vector.broadcast %cst_64 : f32 to vector<1x128xf32>
    %206 = arith.maximumf %204, %205 : vector<1x128xf32>
    %207 = vector.extract_strided_slice %0 {offsets = [17, 0], sizes = [1, 128], strides = [1, 1]} : vector<32x128xf32> to vector<1x128xf32>
    %cst_65 = arith.constant 9.99999974E-6 : f32
    %208 = vector.broadcast %cst_65 : f32 to vector<1x128xf32>
    %209 = arith.addf %206, %208 : vector<1x128xf32>
    %210 = math.rsqrt %209 : vector<1x128xf32>
    %211 = arith.mulf %207, %210 : vector<1x128xf32>
    %212 = vector.extract_strided_slice %0 {offsets = [18, 0], sizes = [1, 128], strides = [1, 1]} : vector<32x128xf32> to vector<1x128xf32>
    %213 = arith.mulf %197, %211 : vector<1x128xf32>
    %214 = arith.subf %212, %213 : vector<1x128xf32>
    %215 = vector.broadcast %211 : vector<1x128xf32> to vector<8x128xf32>
    %216 = arith.mulf %193, %215 : vector<8x128xf32>
    %217 = vector.broadcast %214 : vector<1x128xf32> to vector<8x128xf32>
    %218 = arith.addf %216, %217 : vector<8x128xf32>
    %c7 = arith.constant 7 : index
    %c0_66 = arith.constant 0 : index
    %c0_67 = arith.constant 0 : index
    %219 = vector.load %arg1[%c7, %c0_66, %c0_67] : memref<12x128x128xbf16, #tpu.memory_space<vmem>>, vector<1x128x128xbf16>
    %220 = vector.shape_cast %219 : vector<1x128x128xbf16> to vector<128x128xbf16>
    %221 = vector.extract_strided_slice %0 {offsets = [19, 0], sizes = [1, 128], strides = [1, 1]} : vector<32x128xf32> to vector<1x128xf32>
    %222 = arith.truncf %218 : vector<8x128xf32> to vector<8x128xbf16>
    %cst_68 = arith.constant dense<0.000000e+00> : vector<8x128xf32>
    %223 = tpu.matmul %222, %220, %cst_68 {dimension_numbers = #tpu.dot_dimension_numbers<[1], [0], [0], [1], [0, 0, 1, 1], [], []>} : vector<8x128xbf16>, vector<128x128xbf16>, vector<8x128xf32> -> vector<8x128xf32>
    %224 = vector.broadcast %221 : vector<1x128xf32> to vector<8x128xf32>
    %225 = arith.addf %223, %224 : vector<8x128xf32>
    %cst_69 = arith.constant 2.000000e-01 : f32
    %226 = vector.broadcast %cst_69 : f32 to vector<8x128xf32>
    %227 = arith.mulf %226, %225 : vector<8x128xf32>
    %228 = arith.maximumf %225, %227 : vector<8x128xf32>
    %cst_70 = arith.constant dense<0.000000e+00> : vector<128xf32>
    %229 = vector.multi_reduction <add>, %228, %cst_70 [0] : vector<8x128xf32> to vector<128xf32>
    %230 = vector.shape_cast %229 : vector<128xf32> to vector<1x128xf32>
    %cst_71 = arith.constant 1.250000e-01 : f32
    %231 = vector.broadcast %cst_71 : f32 to vector<1x128xf32>
    %232 = arith.mulf %230, %231 : vector<1x128xf32>
    %233 = arith.mulf %228, %228 : vector<8x128xf32>
    %cst_72 = arith.constant dense<0.000000e+00> : vector<128xf32>
    %234 = vector.multi_reduction <add>, %233, %cst_72 [0] : vector<8x128xf32> to vector<128xf32>
    %235 = vector.shape_cast %234 : vector<128xf32> to vector<1x128xf32>
    %cst_73 = arith.constant 1.250000e-01 : f32
    %236 = vector.broadcast %cst_73 : f32 to vector<1x128xf32>
    %237 = arith.mulf %235, %236 : vector<1x128xf32>
    %238 = arith.mulf %232, %232 : vector<1x128xf32>
    %239 = arith.subf %237, %238 : vector<1x128xf32>
    %cst_74 = arith.constant 0.000000e+00 : f32
    %240 = vector.broadcast %cst_74 : f32 to vector<1x128xf32>
    %241 = arith.maximumf %239, %240 : vector<1x128xf32>
    %242 = vector.extract_strided_slice %0 {offsets = [20, 0], sizes = [1, 128], strides = [1, 1]} : vector<32x128xf32> to vector<1x128xf32>
    %cst_75 = arith.constant 9.99999974E-6 : f32
    %243 = vector.broadcast %cst_75 : f32 to vector<1x128xf32>
    %244 = arith.addf %241, %243 : vector<1x128xf32>
    %245 = math.rsqrt %244 : vector<1x128xf32>
    %246 = arith.mulf %242, %245 : vector<1x128xf32>
    %247 = vector.extract_strided_slice %0 {offsets = [21, 0], sizes = [1, 128], strides = [1, 1]} : vector<32x128xf32> to vector<1x128xf32>
    %248 = arith.mulf %232, %246 : vector<1x128xf32>
    %249 = arith.subf %247, %248 : vector<1x128xf32>
    %250 = vector.broadcast %246 : vector<1x128xf32> to vector<8x128xf32>
    %251 = arith.mulf %228, %250 : vector<8x128xf32>
    %252 = vector.broadcast %249 : vector<1x128xf32> to vector<8x128xf32>
    %253 = arith.addf %251, %252 : vector<8x128xf32>
    %c8 = arith.constant 8 : index
    %c0_76 = arith.constant 0 : index
    %c0_77 = arith.constant 0 : index
    %254 = vector.load %arg1[%c8, %c0_76, %c0_77] : memref<12x128x128xbf16, #tpu.memory_space<vmem>>, vector<1x128x128xbf16>
    %255 = vector.shape_cast %254 : vector<1x128x128xbf16> to vector<128x128xbf16>
    %256 = vector.extract_strided_slice %0 {offsets = [22, 0], sizes = [1, 128], strides = [1, 1]} : vector<32x128xf32> to vector<1x128xf32>
    %257 = arith.truncf %253 : vector<8x128xf32> to vector<8x128xbf16>
    %cst_78 = arith.constant dense<0.000000e+00> : vector<8x128xf32>
    %258 = tpu.matmul %257, %255, %cst_78 {dimension_numbers = #tpu.dot_dimension_numbers<[1], [0], [0], [1], [0, 0, 1, 1], [], []>} : vector<8x128xbf16>, vector<128x128xbf16>, vector<8x128xf32> -> vector<8x128xf32>
    %259 = vector.broadcast %256 : vector<1x128xf32> to vector<8x128xf32>
    %260 = arith.addf %258, %259 : vector<8x128xf32>
    %cst_79 = arith.constant 2.000000e-01 : f32
    %261 = vector.broadcast %cst_79 : f32 to vector<8x128xf32>
    %262 = arith.mulf %261, %260 : vector<8x128xf32>
    %263 = arith.maximumf %260, %262 : vector<8x128xf32>
    %cst_80 = arith.constant dense<0.000000e+00> : vector<128xf32>
    %264 = vector.multi_reduction <add>, %263, %cst_80 [0] : vector<8x128xf32> to vector<128xf32>
    %265 = vector.shape_cast %264 : vector<128xf32> to vector<1x128xf32>
    %cst_81 = arith.constant 1.250000e-01 : f32
    %266 = vector.broadcast %cst_81 : f32 to vector<1x128xf32>
    %267 = arith.mulf %265, %266 : vector<1x128xf32>
    %268 = arith.mulf %263, %263 : vector<8x128xf32>
    %cst_82 = arith.constant dense<0.000000e+00> : vector<128xf32>
    %269 = vector.multi_reduction <add>, %268, %cst_82 [0] : vector<8x128xf32> to vector<128xf32>
    %270 = vector.shape_cast %269 : vector<128xf32> to vector<1x128xf32>
    %cst_83 = arith.constant 1.250000e-01 : f32
    %271 = vector.broadcast %cst_83 : f32 to vector<1x128xf32>
    %272 = arith.mulf %270, %271 : vector<1x128xf32>
    %273 = arith.mulf %267, %267 : vector<1x128xf32>
    %274 = arith.subf %272, %273 : vector<1x128xf32>
    %cst_84 = arith.constant 0.000000e+00 : f32
    %275 = vector.broadcast %cst_84 : f32 to vector<1x128xf32>
    %276 = arith.maximumf %274, %275 : vector<1x128xf32>
    %277 = vector.extract_strided_slice %0 {offsets = [23, 0], sizes = [1, 128], strides = [1, 1]} : vector<32x128xf32> to vector<1x128xf32>
    %cst_85 = arith.constant 9.99999974E-6 : f32
    %278 = vector.broadcast %cst_85 : f32 to vector<1x128xf32>
    %279 = arith.addf %276, %278 : vector<1x128xf32>
    %280 = math.rsqrt %279 : vector<1x128xf32>
    %281 = arith.mulf %277, %280 : vector<1x128xf32>
    %282 = vector.extract_strided_slice %0 {offsets = [24, 0], sizes = [1, 128], strides = [1, 1]} : vector<32x128xf32> to vector<1x128xf32>
    %283 = arith.mulf %267, %281 : vector<1x128xf32>
    %284 = arith.subf %282, %283 : vector<1x128xf32>
    %285 = vector.broadcast %281 : vector<1x128xf32> to vector<8x128xf32>
    %286 = arith.mulf %263, %285 : vector<8x128xf32>
    %287 = vector.broadcast %284 : vector<1x128xf32> to vector<8x128xf32>
    %288 = arith.addf %286, %287 : vector<8x128xf32>
    %c9 = arith.constant 9 : index
    %c0_86 = arith.constant 0 : index
    %c0_87 = arith.constant 0 : index
    %289 = vector.load %arg1[%c9, %c0_86, %c0_87] : memref<12x128x128xbf16, #tpu.memory_space<vmem>>, vector<1x128x128xbf16>
    %290 = vector.shape_cast %289 : vector<1x128x128xbf16> to vector<128x128xbf16>
    %291 = vector.extract_strided_slice %0 {offsets = [25, 0], sizes = [1, 128], strides = [1, 1]} : vector<32x128xf32> to vector<1x128xf32>
    %292 = arith.truncf %288 : vector<8x128xf32> to vector<8x128xbf16>
    %cst_88 = arith.constant dense<0.000000e+00> : vector<8x128xf32>
    %293 = tpu.matmul %292, %290, %cst_88 {dimension_numbers = #tpu.dot_dimension_numbers<[1], [0], [0], [1], [0, 0, 1, 1], [], []>} : vector<8x128xbf16>, vector<128x128xbf16>, vector<8x128xf32> -> vector<8x128xf32>
    %294 = vector.broadcast %291 : vector<1x128xf32> to vector<8x128xf32>
    %295 = arith.addf %293, %294 : vector<8x128xf32>
    %cst_89 = arith.constant 2.000000e-01 : f32
    %296 = vector.broadcast %cst_89 : f32 to vector<8x128xf32>
    %297 = arith.mulf %296, %295 : vector<8x128xf32>
    %298 = arith.maximumf %295, %297 : vector<8x128xf32>
    %cst_90 = arith.constant dense<0.000000e+00> : vector<128xf32>
    %299 = vector.multi_reduction <add>, %298, %cst_90 [0] : vector<8x128xf32> to vector<128xf32>
    %300 = vector.shape_cast %299 : vector<128xf32> to vector<1x128xf32>
    %cst_91 = arith.constant 1.250000e-01 : f32
    %301 = vector.broadcast %cst_91 : f32 to vector<1x128xf32>
    %302 = arith.mulf %300, %301 : vector<1x128xf32>
    %303 = arith.mulf %298, %298 : vector<8x128xf32>
    %cst_92 = arith.constant dense<0.000000e+00> : vector<128xf32>
    %304 = vector.multi_reduction <add>, %303, %cst_92 [0] : vector<8x128xf32> to vector<128xf32>
    %305 = vector.shape_cast %304 : vector<128xf32> to vector<1x128xf32>
    %cst_93 = arith.constant 1.250000e-01 : f32
    %306 = vector.broadcast %cst_93 : f32 to vector<1x128xf32>
    %307 = arith.mulf %305, %306 : vector<1x128xf32>
    %308 = arith.mulf %302, %302 : vector<1x128xf32>
    %309 = arith.subf %307, %308 : vector<1x128xf32>
    %cst_94 = arith.constant 0.000000e+00 : f32
    %310 = vector.broadcast %cst_94 : f32 to vector<1x128xf32>
    %311 = arith.maximumf %309, %310 : vector<1x128xf32>
    %312 = vector.extract_strided_slice %0 {offsets = [26, 0], sizes = [1, 128], strides = [1, 1]} : vector<32x128xf32> to vector<1x128xf32>
    %cst_95 = arith.constant 9.99999974E-6 : f32
    %313 = vector.broadcast %cst_95 : f32 to vector<1x128xf32>
    %314 = arith.addf %311, %313 : vector<1x128xf32>
    %315 = math.rsqrt %314 : vector<1x128xf32>
    %316 = arith.mulf %312, %315 : vector<1x128xf32>
    %317 = vector.extract_strided_slice %0 {offsets = [27, 0], sizes = [1, 128], strides = [1, 1]} : vector<32x128xf32> to vector<1x128xf32>
    %318 = arith.mulf %302, %316 : vector<1x128xf32>
    %319 = arith.subf %317, %318 : vector<1x128xf32>
    %320 = vector.broadcast %316 : vector<1x128xf32> to vector<8x128xf32>
    %321 = arith.mulf %298, %320 : vector<8x128xf32>
    %322 = vector.broadcast %319 : vector<1x128xf32> to vector<8x128xf32>
    %323 = arith.addf %321, %322 : vector<8x128xf32>
    %c10 = arith.constant 10 : index
    %c0_96 = arith.constant 0 : index
    %c0_97 = arith.constant 0 : index
    %324 = vector.load %arg1[%c10, %c0_96, %c0_97] : memref<12x128x128xbf16, #tpu.memory_space<vmem>>, vector<1x128x128xbf16>
    %325 = vector.shape_cast %324 : vector<1x128x128xbf16> to vector<128x128xbf16>
    %326 = vector.extract_strided_slice %0 {offsets = [28, 0], sizes = [1, 128], strides = [1, 1]} : vector<32x128xf32> to vector<1x128xf32>
    %327 = arith.truncf %323 : vector<8x128xf32> to vector<8x128xbf16>
    %cst_98 = arith.constant dense<0.000000e+00> : vector<8x128xf32>
    %328 = tpu.matmul %327, %325, %cst_98 {dimension_numbers = #tpu.dot_dimension_numbers<[1], [0], [0], [1], [0, 0, 1, 1], [], []>} : vector<8x128xbf16>, vector<128x128xbf16>, vector<8x128xf32> -> vector<8x128xf32>
    %329 = vector.broadcast %326 : vector<1x128xf32> to vector<8x128xf32>
    %330 = arith.addf %328, %329 : vector<8x128xf32>
    %cst_99 = arith.constant 2.000000e-01 : f32
    %331 = vector.broadcast %cst_99 : f32 to vector<8x128xf32>
    %332 = arith.mulf %331, %330 : vector<8x128xf32>
    %333 = arith.maximumf %330, %332 : vector<8x128xf32>
    %cst_100 = arith.constant dense<0.000000e+00> : vector<128xf32>
    %334 = vector.multi_reduction <add>, %333, %cst_100 [0] : vector<8x128xf32> to vector<128xf32>
    %335 = vector.shape_cast %334 : vector<128xf32> to vector<1x128xf32>
    %cst_101 = arith.constant 1.250000e-01 : f32
    %336 = vector.broadcast %cst_101 : f32 to vector<1x128xf32>
    %337 = arith.mulf %335, %336 : vector<1x128xf32>
    %338 = arith.mulf %333, %333 : vector<8x128xf32>
    %cst_102 = arith.constant dense<0.000000e+00> : vector<128xf32>
    %339 = vector.multi_reduction <add>, %338, %cst_102 [0] : vector<8x128xf32> to vector<128xf32>
    %340 = vector.shape_cast %339 : vector<128xf32> to vector<1x128xf32>
    %cst_103 = arith.constant 1.250000e-01 : f32
    %341 = vector.broadcast %cst_103 : f32 to vector<1x128xf32>
    %342 = arith.mulf %340, %341 : vector<1x128xf32>
    %343 = arith.mulf %337, %337 : vector<1x128xf32>
    %344 = arith.subf %342, %343 : vector<1x128xf32>
    %cst_104 = arith.constant 0.000000e+00 : f32
    %345 = vector.broadcast %cst_104 : f32 to vector<1x128xf32>
    %346 = arith.maximumf %344, %345 : vector<1x128xf32>
    %347 = vector.extract_strided_slice %0 {offsets = [29, 0], sizes = [1, 128], strides = [1, 1]} : vector<32x128xf32> to vector<1x128xf32>
    %cst_105 = arith.constant 9.99999974E-6 : f32
    %348 = vector.broadcast %cst_105 : f32 to vector<1x128xf32>
    %349 = arith.addf %346, %348 : vector<1x128xf32>
    %350 = math.rsqrt %349 : vector<1x128xf32>
    %351 = arith.mulf %347, %350 : vector<1x128xf32>
    %352 = vector.extract_strided_slice %0 {offsets = [30, 0], sizes = [1, 128], strides = [1, 1]} : vector<32x128xf32> to vector<1x128xf32>
    %353 = arith.mulf %337, %351 : vector<1x128xf32>
    %354 = arith.subf %352, %353 : vector<1x128xf32>
    %355 = vector.broadcast %351 : vector<1x128xf32> to vector<8x128xf32>
    %356 = arith.mulf %333, %355 : vector<8x128xf32>
    %357 = vector.broadcast %354 : vector<1x128xf32> to vector<8x128xf32>
    %358 = arith.addf %356, %357 : vector<8x128xf32>
    %c11 = arith.constant 11 : index
    %c0_106 = arith.constant 0 : index
    %c0_107 = arith.constant 0 : index
    %359 = vector.load %arg1[%c11, %c0_106, %c0_107] : memref<12x128x128xbf16, #tpu.memory_space<vmem>>, vector<1x128x128xbf16>
    %360 = vector.shape_cast %359 : vector<1x128x128xbf16> to vector<128x128xbf16>
    %361 = vector.extract_strided_slice %0 {offsets = [31, 0], sizes = [1, 128], strides = [1, 1]} : vector<32x128xf32> to vector<1x128xf32>
    %362 = arith.truncf %358 : vector<8x128xf32> to vector<8x128xbf16>
    %cst_108 = arith.constant dense<0.000000e+00> : vector<8x128xf32>
    %363 = tpu.matmul %362, %360, %cst_108 {dimension_numbers = #tpu.dot_dimension_numbers<[1], [0], [0], [1], [0, 0, 1, 1], [], []>} : vector<8x128xbf16>, vector<128x128xbf16>, vector<8x128xf32> -> vector<8x128xf32>
    %364 = vector.broadcast %361 : vector<1x128xf32> to vector<8x128xf32>
    %365 = arith.addf %363, %364 : vector<8x128xf32>
    %c0_109 = arith.constant 0 : index
    %c0_110 = arith.constant 0 : index
    %366 = vector.load %arg3[%c0_109, %c0_110] : memref<8x128xf32, #tpu.memory_space<vmem>>, vector<8x128xf32>
    tpu.vector_store %arg3[%c0_109, %c0_110], %365 {strides = array<i32>} : memref<8x128xf32, #tpu.memory_space<vmem>>, vector<8x128xf32>,
    return
  }
}

</mosaic_0001>

<bundles_post_ra>
// kernel: tpu_custom_call.1
= control target key start
LH: loop header
LB: loop body
LE: loop exit
PB: predicated region body
PF: predicated region fallthrough
CT: control target
= control target key end

     0   :  { %8 = vsyncpa [#allocation3], 0  ;;  %s2736_s0 = inlined_call_operand.hbm [shape: f32[8,128], index: 0, kind: input, shape index: {}]   ;;  %s2737_s1 = inlined_call_operand.hbm [shape: bf16[12,128,128], index: 1, kind: input, shape index: {}]   ;;  %s2738_s2 = inlined_call_operand.hbm [shape: f32[32,128], index: 2, kind: input, shape index: {}]   ;;  %s2739_s3 = inlined_call_operand.hbm [shape: f32[8,128], index: 3, kind: output, shape index: {}]  }
   0x1   :  { %9 = vsyncpa [#allocation6], 0 }
   0x2   :  { %10 = vsyncpa [#allocation4], 0  ;;  %s2440_s12 = smov [#allocation5]   ;;  %s2346_s16 = scalar_lea.hbm %s2737_s1, 12288 }
   0x3   :  { %s26_s13 = sshll.u32 %s2440_s12, 4  ;;  %p2347_p0 = scmp.ne.s32.totalorder %s2737_s1, %s2346_s16  ;;  %s27_s13 = int_to_ptr.vmem [resolvable:$true] %s26_s13 }
   0x4   :  { %p2350_p1 = scmp.lt.u32.totalorder %s2346_s16, %s2737_s1 }
   0x6   :  { %p2352_p2 = pnand %p2350_p1, %p2347_p0 }
   0x8   :  { %2355 = shalt.err (!%p2352_p2)
}
   0x9   :  { %s2356_s21 = scalar_lea.vmem %s27_s13, 12288  ;;  %p2361_p4 = scmp.lt.s32.totalorder %s27_s13, %s27_s13 }
   0xa   :  { %p2357_p3 = scmp.ne.s32.totalorder %s27_s13, %s2356_s21  ;;  %p2362_p5 = scmp.lt.s32.totalorder %s2356_s21, %s2356_s21 }
   0xc   :  { %p2363_p6 = por %p2362_p5, %p2361_p4 }
   0xe   :  { %p2364_p7 = pnand %p2363_p6, %p2357_p3 }
  0x10   :  { %2367 = shalt.err (!%p2364_p7)
}
  0x11   :  { %s2441_s22 = smov 64   ;;  %s2442_s23 = smov 4  }
  0x12   :  { %32 = dma.hbm_to_vmem [thread:$0]  %s2737_s1, 12288, %s27_s13, [#allocation6], %s2441_s22, %s2441_s22, %s2442_s23  }
  0x13   :  { %s2443_s26 = smov [#allocation2]   ;;  %s2444_s28 = smov [#allocation7]  }
  0x14   :  { %s17_s27 = sshll.u32 %s2443_s26, 4  ;;  %s38_s29 = sshll.u32 %s2444_s28, 4  ;;  %s18_s27 = int_to_ptr.vmem [resolvable:$true] %s17_s27  ;;  %s39_s29 = int_to_ptr.vmem [resolvable:$true] %s38_s29 }
  0x15   :  { %s2368_s5 = scalar_lea.hbm %s2736_s0, 128 }
  0x16   :  { %p2369_p8 = scmp.ne.s32.totalorder %s2736_s0, %s2368_s5  ;;  %p2372_p9 = scmp.lt.u32.totalorder %s2368_s5, %s2736_s0 }
  0x18   :  { %p2374_p10 = pnand %p2372_p9, %p2369_p8 }
  0x1a   :  { %2377 = shalt.err (!%p2374_p10)
}
  0x1b   :  { %s2378_s1 = scalar_lea.vmem %s18_s27, 128  ;;  %p2383_p12 = scmp.lt.s32.totalorder %s18_s27, %s18_s27 }
  0x1c   :  { %p2379_p11 = scmp.ne.s32.totalorder %s18_s27, %s2378_s1  ;;  %p2384_p13 = scmp.lt.s32.totalorder %s2378_s1, %s2378_s1 }
  0x1e   :  { %p2385_p0 = por %p2384_p13, %p2383_p12 }
  0x20   :  { %p2386_p1 = pnand %p2385_p0, %p2379_p11 }
  0x22   :  { %2389 = shalt.err (!%p2386_p1)
}
  0x23   :  { %20 = dma.hbm_to_vmem [thread:$0]  %s2736_s0, 128, %s18_s27, [#allocation3]  }
  0x24   :  { %s2390_s14 = scalar_lea.hbm %s2738_s2, 512 }
  0x25   :  { %p2391_p2 = scmp.ne.s32.totalorder %s2738_s2, %s2390_s14  ;;  %p2394_p3 = scmp.lt.u32.totalorder %s2390_s14, %s2738_s2 }
  0x27   :  { %p2396_p4 = pnand %p2394_p3, %p2391_p2 }
  0x29   :  { %2399 = shalt.err (!%p2396_p4)
}
  0x2a   :  { %s2400_s19 = scalar_lea.vmem %s39_s29, 512  ;;  %p2405_p6 = scmp.lt.s32.totalorder %s39_s29, %s39_s29 }
  0x2b   :  { %p2401_p5 = scmp.ne.s32.totalorder %s39_s29, %s2400_s19  ;;  %p2406_p7 = scmp.lt.s32.totalorder %s2400_s19, %s2400_s19 }
  0x2d   :  { %p2407_p8 = por %p2406_p7, %p2405_p6 }
  0x2f   :  { %p2408_p9 = pnand %p2407_p8, %p2401_p5 }
  0x31   :  { %2411 = shalt.err (!%p2408_p9)
}
  0x32   :  { %s2445_s0 = smov 128   ;;  %s2446_s20 = smov 8  }
  0x33   :  { %44 = dma.hbm_to_vmem [thread:$0]  %s2738_s2, 512, %s39_s29, [#allocation6], %s2445_s0, %s2445_s0, %s2446_s20  }
  0x34   :  { %2434 = dma.done.wait [#allocation3], 128  }
  0x35   :  { %2435 = vsyncadd [#allocation3], 4294967168 }
  0x36   :  { %2436 = dma.done.wait [#allocation6], 12800  }
  0x37   :  { %2437 = vsyncadd [#allocation6], 4294954496  ;;  %v2447_v0 = vmov 0.0   ;;  %vm2448_vm0 = vmmov 0   ;;  %v2230_v1 = vld [vmem:[#allocation5] sm:$0xff]   ;;  %v2231_v2 = vld [vmem:[#allocation5 + $0x8] sm:$0xff]   ;;  %v77_v19 = vlaneseq }
  0x38   :  { %1980 = vmatprep.subr.bf16.mxu0 %v2447_v0  ;;  %1996 = vmatprep.mubr.msk.bf16.mxu0 %vm2448_vm0, %v2447_v0  ;;  %v2232_v3 = vld [vmem:[#allocation5 + $0x10] sm:$0xff]   ;;  %v2233_v4 = vld [vmem:[#allocation5 + $0x18] sm:$0xff]   ;;  %v2234_v5 = vld [vmem:[#allocation5 + $0x20] sm:$0xff]   ;;  %s2449_s2 = smov [#allocation8]  }
  0x39   :  { %2000 = vmatprep.subr.bf16.mxu1 %v2447_v0  ;;  %2016 = vmatprep.mubr.msk.bf16.mxu1 %vm2448_vm0, %v2447_v0  ;;  %v2235_v6 = vld [vmem:[#allocation5 + $0x28] sm:$0xff]   ;;  %v2236_v7 = vld [vmem:[#allocation5 + $0x30] sm:$0xff]   ;;  %v2237_v8 = vld [vmem:[#allocation5 + $0x38] sm:$0xff]   ;;  %v2530_v20 = vshrl.u32 %v77_v19, 7  ;;  %s1766_s23 = sshll.u32 %s2449_s2, 4  ;;  %s1767_s23 = int_to_ptr.vmem [resolvable:$true] %s1766_s23 }
  0x3a   :  { %1981 = vmatpush3.bf16.msra.mxu0 %v2230_v1  ;;  %v59_v9 = vld [vmem:[#allocation2] sm:$0xff]  ;;  %v2238_v11 = vld [vmem:[#allocation5 + $0x40] sm:$0xff]   ;;  %v2239_v12 = vld [vmem:[#allocation5 + $0x48] sm:$0xff]   ;;  %s2412_s24 = scalar_lea.vmem %s1767_s23, 128  ;;  %p2417_p11 = scmp.lt.s32.totalorder %s1767_s23, %s1767_s23 }
  0x3b   :  { %1982 = vmatprep.subr.bf16.mxu0 %v2447_v0  ;;  %v76_v10 = vpack.c.bf16 %v59_v9, %v59_v9  ;;  %2001 = vmatpush3.bf16.msra.mxu1 %v2238_v11  ;;  %v2240_v13 = vld [vmem:[#allocation5 + $0x50] sm:$0xff]   ;;  %v2241_v14 = vld [vmem:[#allocation5 + $0x58] sm:$0xff]   ;;  %v2242_v15 = vld [vmem:[#allocation5 + $0x60] sm:$0xff]   ;;  %v2533_v21 = vsub.s32 0, %v2530_v20  ;;  %v2541_v52 = vsub.s32 1, %v2530_v20  ;;  %v2545_v56 = vsub.s32 2, %v2530_v20  ;;  %p2413_p10 = scmp.ne.s32.totalorder %s1767_s23, %s2412_s24  ;;  %p2418_p12 = scmp.lt.s32.totalorder %s2412_s24, %s2412_s24 }
  0x3c   :  { %2002 = vmatprep.subr.bf16.mxu1 %v2447_v0  ;;  %v2243_v16 = vld [vmem:[#allocation5 + $0x68] sm:$0xff]   ;;  %v2244_v17 = vld [vmem:[#allocation5 + $0x70] sm:$0xff]   ;;  %v2245_v18 = vld [vmem:[#allocation5 + $0x78] sm:$0xff]  }
  0x3d   :  { %v2535_v22 = vld [vmem:[#allocation7] sm:$0xff]  ;;  %v2247_v63 = vld [vmem:[#allocation5 + $0x88] sm:$0xff]   ;;  %v2248_v1 = vld [vmem:[#allocation5 + $0x90] sm:$0xff]   ;;  %p2419_p13 = por %p2418_p12, %p2417_p11 }
  0x3e   :  { %1983 = vmatpush3.bf16.msra.mxu0 %v2231_v2  ;;  %v80_v23 = vrot.slane %v2535_v22, %v2533_v21  ;;  %v2246_v62 = vld [vmem:[#allocation5 + $0x80] sm:$0xff]   ;;  %v2249_v2 = vld [vmem:[#allocation5 + $0x98] sm:$0xff]  }
  0x3f   :  { %1984 = vmatprep.subr.bf16.mxu0 %v2447_v0  ;;  %2003 = vmatpush3.bf16.msra.mxu1 %v2239_v12  ;;  %p2420_p0 = pnand %p2419_p13, %p2413_p10 }
  0x40   :  { %2004 = vmatprep.subr.bf16.mxu1 %v2447_v0 }
  0x42   :  { %1985 = vmatpush3.bf16.msra.mxu0 %v2232_v3  ;;  %v2250_v3 = vld [vmem:[#allocation5 + $0xa0] sm:$0xff]  }
  0x43   :  { %1986 = vmatprep.subr.bf16.mxu0 %v2447_v0  ;;  %2005 = vmatpush3.bf16.msra.mxu1 %v2240_v13 }
  0x44   :  { %2006 = vmatprep.subr.bf16.mxu1 %v2447_v0 }
  0x46   :  { %1987 = vmatpush3.bf16.msra.mxu0 %v2233_v4  ;;  %v2251_v4 = vld [vmem:[#allocation5 + $0xa8] sm:$0xff]  }
  0x47   :  { %1988 = vmatprep.subr.bf16.mxu0 %v2447_v0  ;;  %2007 = vmatpush3.bf16.msra.mxu1 %v2241_v14 }
  0x48   :  { %2008 = vmatprep.subr.bf16.mxu1 %v2447_v0 }
  0x4a   :  { %1989 = vmatpush3.bf16.msra.mxu0 %v2234_v5  ;;  %v2252_v5 = vld [vmem:[#allocation5 + $0xb0] sm:$0xff]  }
  0x4b   :  { %1990 = vmatprep.subr.bf16.mxu0 %v2447_v0  ;;  %2009 = vmatpush3.bf16.msra.mxu1 %v2242_v15 }
  0x4c   :  { %2010 = vmatprep.subr.bf16.mxu1 %v2447_v0 }
  0x4e   :  { %1991 = vmatpush3.bf16.msra.mxu0 %v2235_v6  ;;  %v2253_v6 = vld [vmem:[#allocation5 + $0xb8] sm:$0xff]  }
  0x4f   :  { %1992 = vmatprep.subr.bf16.mxu0 %v2447_v0  ;;  %2011 = vmatpush3.bf16.msra.mxu1 %v2243_v16 }
  0x50   :  { %2012 = vmatprep.subr.bf16.mxu1 %v2447_v0 }
  0x52   :  { %1993 = vmatpush3.bf16.msra.mxu0 %v2236_v7  ;;  %v2560_v7 = vsub.s32 3, %v2530_v20 }
  0x53   :  { %1994 = vmatprep.subr.bf16.mxu0 %v2447_v0  ;;  %2013 = vmatpush3.bf16.msra.mxu1 %v2244_v17 }
  0x54   :  { %2014 = vmatprep.subr.bf16.mxu1 %v2447_v0 }
  0x56   :  { %1995 = vmatpush3.bf16.msra.mxu0 %v2237_v8  ;;  %v228_v8 = vrot.slane %v2535_v22, %v2560_v7 }
  0x57   :  { %2020 = vmatprep.subr.bf16.mxu0 %v2447_v0  ;;  %2015 = vmatpush3.bf16.msra.mxu1 %v2245_v18 }
  0x58   :  { %2040 = vmatprep.subr.bf16.mxu1 %v2447_v0 }
  0x59   :  { %1997 = vmatmul.mubr.bf16.vlgmr.msra.gmra.mrb[0].mxu0 %v76_v10 }
  0x5a   :  { %2036 = vmatprep.mubr.msk.bf16.mxu0 %vm2448_vm0, %v2447_v0  ;;  %2021 = vmatpush3.bf16.msra.mxu0 %v2246_v62 }
  0x5b   :  { %2022 = vmatprep.subr.bf16.mxu0 %v2447_v0 }
  0x5e   :  { %2023 = vmatpush3.bf16.msra.mxu0 %v2247_v63 }
  0x5f   :  { %2024 = vmatprep.subr.bf16.mxu0 %v2447_v0 }
  0x62   :  { %2025 = vmatpush3.bf16.msra.mxu0 %v2248_v1 }
  0x63   :  { %2026 = vmatprep.subr.bf16.mxu0 %v2447_v0 }
  0x66   :  { %2027 = vmatpush3.bf16.msra.mxu0 %v2249_v2 }
  0x67   :  { %2028 = vmatprep.subr.bf16.mxu0 %v2447_v0 }
  0x6a   :  { %2029 = vmatpush3.bf16.msra.mxu0 %v2250_v3 }
  0x6b   :  { %2030 = vmatprep.subr.bf16.mxu0 %v2447_v0 }
  0x6e   :  { %2031 = vmatpush3.bf16.msra.mxu0 %v2251_v4 }
  0x6f   :  { %2032 = vmatprep.subr.bf16.mxu0 %v2447_v0 }
  0x72   :  { %2033 = vmatpush3.bf16.msra.mxu0 %v2252_v5 }
  0x73   :  { %2034 = vmatprep.subr.bf16.mxu0 %v2447_v0 }
  0x76   :  { %2035 = vmatpush3.bf16.msra.mxu0 %v2253_v6 }
  0x77   :  { %2060 = vmatprep.subr.bf16.mxu0 %v2447_v0 }
 0x12c   :  { %v163_v24 = vpop.f32.mrb[0].mxu0 }
 0x12d   :  { %v164_v25 = vadd.f32 %v163_v24, %v80_v23  ;;  %v1998_v26 = vpop.f32.mrb[1].mxu0 }
 0x12e   :  { %v166_v27 = vpop.f32.mrb[2].mxu0 }
 0x12f   :  { %v169_v28 = vmul.f32 0.2, %v164_v25  ;;  %v1999_v29 = vpop.f32.mrb[3].mxu0 }
 0x131   :  { %v170_v30 = vmax.f32 %v164_v25, %v169_v28 }
 0x133   :  { %v171_v31 = vrot.slane %v170_v30, 4  ;;  %v178_v32 = vmul.f32 %v170_v30, %v170_v30 }
 0x135   :  { %v172_v33 = vadd.f32 %v171_v31, %v170_v30  ;;  %v179_v34 = vrot.slane %v178_v32, 4 }
 0x137   :  { %v173_v35 = vrot.slane %v172_v33, 2  ;;  %v180_v36 = vadd.f32 %v179_v34, %v178_v32 }
 0x139   :  { %v174_v37 = vadd.f32 %v173_v35, %v172_v33  ;;  %v181_v38 = vrot.slane %v180_v36, 2 }
 0x13b   :  { %v175_v39 = vrot.slane %v174_v37, 1  ;;  %v182_v40 = vadd.f32 %v181_v38, %v180_v36 }
 0x13d   :  { %v183_v41 = vrot.slane %v182_v40, 1  ;;  %v176_v42 = vadd.f32 %v175_v39, %v174_v37 }
 0x13f   :  { %v184_v43 = vadd.f32 %v183_v41, %v182_v40  ;;  %v177_v44 = vmul.f32 0.125, %v176_v42  ;;  %v2566_v40 = vsub.s32 4, %v2530_v20 }
 0x141   :  { %v185_v45 = vmul.f32 0.125, %v184_v43  ;;  %v186_v46 = vmul.f32 %v177_v44, %v177_v44 }
 0x143   :  { %v187_v47 = vsub.f32 %v185_v45, %v186_v46 }
 0x145   :  { %v188_v48 = vmax.f32 %v187_v47, 0.0 }
 0x147   :  { %v189_v49 = vadd.f32 1e-05, %v188_v48 }
 0x149   :  { %2326 = vrsqrt.f32 %v189_v49 }
 0x153   :  { %v2327_v50 = vpop.eup %2326 }
 0x154   :  { %v191_v51 = vmul.f32 %v2327_v50, %v2535_v22  ;;  %v2254_v50 = vld [vmem:[#allocation5 + $0xc0] sm:$0xff]  }
 0x156   :  { %v192_v53 = vmul.f32 %v191_v51, %v177_v44  ;;  %v200_v55 = vrot.slane %v191_v51, %v2541_v52  ;;  %v2570_v44 = vsub.s32 5, %v2530_v20  ;;  %v2255_v51 = vld [vmem:[#allocation5 + $0xc8] sm:$0xff]  }
 0x158   :  { %v194_v54 = vrot.slane %v192_v53, 7  ;;  %v201_v58 = vmul.f32 %v200_v55, %v170_v30  ;;  %v2256_v53 = vld [vmem:[#allocation5 + $0xd0] sm:$0xff]   ;;  %v2258_v55 = vld [vmem:[#allocation5 + $0xe0] sm:$0xff]  }
 0x15a   :  { %v196_v57 = vsub.f32 %v2535_v22, %v194_v54  ;;  %v2257_v54 = vld [vmem:[#allocation5 + $0xd8] sm:$0xff]  }
 0x15c   :  { %v205_v59 = vrot.slane %v196_v57, %v2545_v56  ;;  %v2259_v57 = vld [vmem:[#allocation5 + $0xe8] sm:$0xff]  }
 0x15e   :  { %v206_v60 = vadd.f32 %v205_v59, %v201_v58  ;;  %v2260_v58 = vld [vmem:[#allocation5 + $0xf0] sm:$0xff]   ;;  %v2261_v59 = vld [vmem:[#allocation5 + $0xf8] sm:$0xff]  }
 0x160   :  { %v224_v61 = vpack.c.bf16 %v206_v60, %v206_v60  ;;  %v2585_v60 = vsub.s32 6, %v2530_v20 }
 0x162   :  { %2017 = vmatmul.mubr.bf16.vlgmr.msra.gmra.mrb[0].mxu1 %v224_v61  ;;  %v376_v61 = vrot.slane %v2535_v22, %v2585_v60 }
 0x163   :  { %2056 = vmatprep.mubr.msk.bf16.mxu1 %vm2448_vm0, %v2447_v0  ;;  %2041 = vmatpush3.bf16.msra.mxu1 %v2254_v50 }
 0x164   :  { %2042 = vmatprep.subr.bf16.mxu1 %v2447_v0 }
 0x167   :  { %2043 = vmatpush3.bf16.msra.mxu1 %v2255_v51 }
 0x168   :  { %2044 = vmatprep.subr.bf16.mxu1 %v2447_v0 }
 0x16b   :  { %2045 = vmatpush3.bf16.msra.mxu1 %v2256_v53 }
 0x16c   :  { %2046 = vmatprep.subr.bf16.mxu1 %v2447_v0 }
 0x16f   :  { %2047 = vmatpush3.bf16.msra.mxu1 %v2257_v54 }
 0x170   :  { %2048 = vmatprep.subr.bf16.mxu1 %v2447_v0 }
 0x173   :  { %2049 = vmatpush3.bf16.msra.mxu1 %v2258_v55 }
 0x174   :  { %2050 = vmatprep.subr.bf16.mxu1 %v2447_v0 }
 0x177   :  { %2051 = vmatpush3.bf16.msra.mxu1 %v2259_v57 }
 0x178   :  { %2052 = vmatprep.subr.bf16.mxu1 %v2447_v0 }
 0x17b   :  { %2053 = vmatpush3.bf16.msra.mxu1 %v2260_v58 }
 0x17c   :  { %2054 = vmatprep.subr.bf16.mxu1 %v2447_v0 }
 0x17f   :  { %2055 = vmatpush3.bf16.msra.mxu1 %v2261_v59 }
 0x180   :  { %2080 = vmatprep.subr.bf16.mxu1 %v2447_v0 }
 0x235   :  { %v311_v9 = vpop.f32.mrb[0].mxu1 }
 0x236   :  { %v312_v10 = vadd.f32 %v311_v9, %v228_v8  ;;  %v2018_v11 = vpop.f32.mrb[1].mxu1 }
 0x237   :  { %v314_v12 = vpop.f32.mrb[2].mxu1 }
 0x238   :  { %v317_v13 = vmul.f32 0.2, %v312_v10  ;;  %v2019_v14 = vpop.f32.mrb[3].mxu1 }
 0x23a   :  { %v318_v15 = vmax.f32 %v312_v10, %v317_v13 }
 0x23c   :  { %v319_v16 = vrot.slane %v318_v15, 4  ;;  %v326_v17 = vmul.f32 %v318_v15, %v318_v15 }
 0x23e   :  { %v320_v18 = vadd.f32 %v319_v16, %v318_v15  ;;  %v327_v19 = vrot.slane %v326_v17, 4 }
 0x240   :  { %v321_v23 = vrot.slane %v320_v18, 2  ;;  %v328_v24 = vadd.f32 %v327_v19, %v326_v17 }
 0x242   :  { %v322_v25 = vadd.f32 %v321_v23, %v320_v18  ;;  %v329_v26 = vrot.slane %v328_v24, 2 }
 0x244   :  { %v323_v27 = vrot.slane %v322_v25, 1  ;;  %v330_v28 = vadd.f32 %v329_v26, %v328_v24 }
 0x246   :  { %v324_v29 = vadd.f32 %v323_v27, %v322_v25  ;;  %v331_v30 = vrot.slane %v330_v28, 1 }
 0x248   :  { %v325_v31 = vmul.f32 0.125, %v324_v29  ;;  %v332_v32 = vadd.f32 %v331_v30, %v330_v28 }
 0x24a   :  { %v333_v33 = vmul.f32 0.125, %v332_v32  ;;  %v334_v34 = vmul.f32 %v325_v31, %v325_v31 }
 0x24c   :  { %v335_v35 = vsub.f32 %v333_v33, %v334_v34  ;;  %v2593_v33 = vld [vmem:[#allocation7 + $0x8] sm:$0xff] }
 0x24e   :  { %v336_v36 = vmax.f32 %v335_v35, 0.0 }
 0x250   :  { %v337_v37 = vadd.f32 1e-05, %v336_v36 }
 0x252   :  { %2328 = vrsqrt.f32 %v337_v37 }
 0x25c   :  { %v2329_v38 = vpop.eup %2328 }
 0x25d   :  { %v339_v39 = vmul.f32 %v2329_v38, %v2535_v22 }
 0x25f   :  { %v340_v41 = vmul.f32 %v339_v39, %v325_v31  ;;  %v348_v43 = vrot.slane %v339_v39, %v2566_v40  ;;  %v2591_v31 = vsub.s32 7, %v2530_v20  ;;  %v2263_v20 = vld [vmem:[#allocation5 + $0x108] sm:$0xff]  }
 0x261   :  { %v342_v42 = vrot.slane %v340_v41, 7  ;;  %v349_v46 = vmul.f32 %v348_v43, %v318_v15  ;;  %v2265_v43 = vld [vmem:[#allocation5 + $0x118] sm:$0xff]  }
 0x263   :  { %v344_v45 = vsub.f32 %v2535_v22, %v342_v42  ;;  %v2264_v42 = vld [vmem:[#allocation5 + $0x110] sm:$0xff]  }
 0x265   :  { %v353_v47 = vrot.slane %v344_v45, %v2570_v44  ;;  %v2266_v45 = vld [vmem:[#allocation5 + $0x120] sm:$0xff]  }
 0x267   :  { %v354_v48 = vadd.f32 %v353_v47, %v349_v46  ;;  %v2267_v46 = vld [vmem:[#allocation5 + $0x128] sm:$0xff]   ;;  %v2268_v47 = vld [vmem:[#allocation5 + $0x130] sm:$0xff]  }
 0x269   :  { %v372_v49 = vpack.c.bf16 %v354_v48, %v354_v48  ;;  %v2269_v48 = vld [vmem:[#allocation5 + $0x138] sm:$0xff]  }
 0x26b   :  { %2037 = vmatmul.mubr.bf16.vlgmr.msra.gmra.mrb[4].mxu0 %v372_v49  ;;  %v524_v49 = vrot.slane %v2593_v33, %v2541_v52 }
 0x26c   :  { %2076 = vmatprep.mubr.msk.bf16.mxu0 %vm2448_vm0, %v2447_v0 }
 0x33e   :  { %v459_v62 = vpop.f32.mrb[4].mxu0 }
 0x33f   :  { %v460_v63 = vadd.f32 %v459_v62, %v376_v61  ;;  %v2038_v1 = vpop.f32.mrb[5].mxu0 }
 0x340   :  { %v462_v2 = vpop.f32.mrb[6].mxu0 }
 0x341   :  { %v465_v3 = vmul.f32 0.2, %v460_v63  ;;  %v2039_v4 = vpop.f32.mrb[7].mxu0 }
 0x343   :  { %v466_v5 = vmax.f32 %v460_v63, %v465_v3 }
 0x345   :  { %v467_v6 = vrot.slane %v466_v5, 4  ;;  %v474_v8 = vmul.f32 %v466_v5, %v466_v5 }
 0x347   :  { %v468_v9 = vadd.f32 %v467_v6, %v466_v5  ;;  %v475_v10 = vrot.slane %v474_v8, 4 }
 0x349   :  { %v469_v11 = vrot.slane %v468_v9, 2  ;;  %v476_v12 = vadd.f32 %v475_v10, %v474_v8 }
 0x34b   :  { %v470_v13 = vadd.f32 %v469_v11, %v468_v9  ;;  %v477_v14 = vrot.slane %v476_v12, 2 }
 0x34d   :  { %v471_v15 = vrot.slane %v470_v13, 1  ;;  %v478_v16 = vadd.f32 %v477_v14, %v476_v12 }
 0x34f   :  { %v472_v17 = vadd.f32 %v471_v15, %v470_v13  ;;  %v479_v18 = vrot.slane %v478_v16, 1 }
 0x351   :  { %v473_v19 = vmul.f32 0.125, %v472_v17  ;;  %v480_v23 = vadd.f32 %v479_v18, %v478_v16 }
 0x353   :  { %v481_v24 = vmul.f32 0.125, %v480_v23  ;;  %v482_v25 = vmul.f32 %v473_v19, %v473_v19 }
 0x355   :  { %v483_v26 = vsub.f32 %v481_v24, %v482_v25 }
 0x357   :  { %v484_v27 = vmax.f32 %v483_v26, 0.0 }
 0x359   :  { %v485_v28 = vadd.f32 1e-05, %v484_v27 }
 0x35b   :  { %2330 = vrsqrt.f32 %v485_v28 }
 0x365   :  { %v2331_v29 = vpop.eup %2330 }
 0x366   :  { %v487_v30 = vmul.f32 %v2331_v29, %v2535_v22  ;;  %v2262_v22 = vld [vmem:[#allocation5 + $0x100] sm:$0xff]  }
 0x367   :  { %2061 = vmatpush3.bf16.msra.mxu0 %v2262_v22  ;;  %v2279_v22 = vld [vmem:[#allocation5 + $0x188] sm:$0xff]  }
 0x368   :  { %v488_v32 = vmul.f32 %v487_v30, %v473_v19  ;;  %v496_v35 = vrot.slane %v487_v30, %v2591_v31  ;;  %2062 = vmatprep.subr.bf16.mxu0 %v2447_v0  ;;  %v2270_v30 = vld [vmem:[#allocation5 + $0x140] sm:$0xff]  }
 0x36a   :  { %v490_v34 = vrot.slane %v488_v32, 7  ;;  %v497_v37 = vmul.f32 %v496_v35, %v466_v5  ;;  %v2271_v32 = vld [vmem:[#allocation5 + $0x148] sm:$0xff]   ;;  %v2273_v35 = vld [vmem:[#allocation5 + $0x158] sm:$0xff]  }
 0x36b   :  { %2063 = vmatpush3.bf16.msra.mxu0 %v2263_v20  ;;  %v2280_v20 = vld [vmem:[#allocation5 + $0x190] sm:$0xff]  }
 0x36c   :  { %v492_v36 = vsub.f32 %v2593_v33, %v490_v34  ;;  %2064 = vmatprep.subr.bf16.mxu0 %v2447_v0  ;;  %v2272_v34 = vld [vmem:[#allocation5 + $0x150] sm:$0xff]  }
 0x36e   :  { %v501_v38 = vrot.slane %v492_v36, %v2533_v21  ;;  %v2274_v36 = vld [vmem:[#allocation5 + $0x160] sm:$0xff]  }
 0x36f   :  { %2065 = vmatpush3.bf16.msra.mxu0 %v2264_v42  ;;  %v2281_v42 = vld [vmem:[#allocation5 + $0x198] sm:$0xff]  }
 0x370   :  { %v502_v39 = vadd.f32 %v501_v38, %v497_v37  ;;  %2066 = vmatprep.subr.bf16.mxu0 %v2447_v0  ;;  %v2275_v37 = vld [vmem:[#allocation5 + $0x168] sm:$0xff]   ;;  %v2276_v38 = vld [vmem:[#allocation5 + $0x170] sm:$0xff]  }
 0x372   :  { %v520_v41 = vpack.c.bf16 %v502_v39, %v502_v39  ;;  %v2277_v39 = vld [vmem:[#allocation5 + $0x178] sm:$0xff]  }
 0x373   :  { %2067 = vmatpush3.bf16.msra.mxu0 %v2265_v43  ;;  %v2282_v43 = vld [vmem:[#allocation5 + $0x1a0] sm:$0xff]  }
 0x374   :  { %2057 = vmatmul.mubr.bf16.vlgmr.msra.gmra.mrb[4].mxu1 %v520_v41  ;;  %2068 = vmatprep.subr.bf16.mxu0 %v2447_v0  ;;  %v2278_v41 = vld [vmem:[#allocation5 + $0x180] sm:$0xff]  }
 0x375   :  { %2096 = vmatprep.mubr.msk.bf16.mxu1 %vm2448_vm0, %v2447_v0  ;;  %2081 = vmatpush3.bf16.msra.mxu1 %v2270_v30 }
 0x376   :  { %2082 = vmatprep.subr.bf16.mxu1 %v2447_v0 }
 0x377   :  { %2069 = vmatpush3.bf16.msra.mxu0 %v2266_v45  ;;  %v2283_v45 = vld [vmem:[#allocation5 + $0x1a8] sm:$0xff]  }
 0x378   :  { %2070 = vmatprep.subr.bf16.mxu0 %v2447_v0 }
 0x379   :  { %2083 = vmatpush3.bf16.msra.mxu1 %v2271_v32 }
 0x37a   :  { %2084 = vmatprep.subr.bf16.mxu1 %v2447_v0 }
 0x37b   :  { %2071 = vmatpush3.bf16.msra.mxu0 %v2267_v46  ;;  %v2284_v46 = vld [vmem:[#allocation5 + $0x1b0] sm:$0xff]  }
 0x37c   :  { %2072 = vmatprep.subr.bf16.mxu0 %v2447_v0 }
 0x37d   :  { %2085 = vmatpush3.bf16.msra.mxu1 %v2272_v34 }
 0x37e   :  { %2086 = vmatprep.subr.bf16.mxu1 %v2447_v0 }
 0x37f   :  { %2073 = vmatpush3.bf16.msra.mxu0 %v2268_v47  ;;  %v672_v47 = vrot.slane %v2593_v33, %v2566_v40 }
 0x380   :  { %2074 = vmatprep.subr.bf16.mxu0 %v2447_v0 }
 0x381   :  { %2087 = vmatpush3.bf16.msra.mxu1 %v2273_v35 }
 0x382   :  { %2088 = vmatprep.subr.bf16.mxu1 %v2447_v0 }
 0x383   :  { %2075 = vmatpush3.bf16.msra.mxu0 %v2269_v48 }
 0x384   :  { %2100 = vmatprep.subr.bf16.mxu0 %v2447_v0 }
 0x385   :  { %2089 = vmatpush3.bf16.msra.mxu1 %v2274_v36 }
 0x386   :  { %2090 = vmatprep.subr.bf16.mxu1 %v2447_v0 }
 0x389   :  { %2091 = vmatpush3.bf16.msra.mxu1 %v2275_v37 }
 0x38a   :  { %2092 = vmatprep.subr.bf16.mxu1 %v2447_v0 }
 0x38d   :  { %2093 = vmatpush3.bf16.msra.mxu1 %v2276_v38  ;;  %v2286_v38 = vld [vmem:[#allocation5 + $0x1c0] sm:$0xff]  }
 0x38e   :  { %2094 = vmatprep.subr.bf16.mxu1 %v2447_v0 }
 0x391   :  { %2095 = vmatpush3.bf16.msra.mxu1 %v2277_v39  ;;  %v2287_v39 = vld [vmem:[#allocation5 + $0x1c8] sm:$0xff]  }
 0x392   :  { %2120 = vmatprep.subr.bf16.mxu1 %v2447_v0 }
 0x447   :  { %v607_v50 = vpop.f32.mrb[4].mxu1 }
 0x448   :  { %v608_v51 = vadd.f32 %v607_v50, %v524_v49  ;;  %v2058_v53 = vpop.f32.mrb[5].mxu1 }
 0x449   :  { %v610_v54 = vpop.f32.mrb[6].mxu1 }
 0x44a   :  { %v613_v55 = vmul.f32 0.2, %v608_v51  ;;  %v2059_v57 = vpop.f32.mrb[7].mxu1 }
 0x44c   :  { %v614_v58 = vmax.f32 %v608_v51, %v613_v55 }
 0x44e   :  { %v615_v59 = vrot.slane %v614_v58, 4  ;;  %v622_v61 = vmul.f32 %v614_v58, %v614_v58 }
 0x450   :  { %v616_v62 = vadd.f32 %v615_v59, %v614_v58  ;;  %v623_v63 = vrot.slane %v622_v61, 4 }
 0x452   :  { %v617_v1 = vrot.slane %v616_v62, 2  ;;  %v624_v2 = vadd.f32 %v623_v63, %v622_v61 }
 0x454   :  { %v618_v3 = vadd.f32 %v617_v1, %v616_v62  ;;  %v625_v4 = vrot.slane %v624_v2, 2 }
 0x456   :  { %v619_v5 = vrot.slane %v618_v3, 1  ;;  %v626_v6 = vadd.f32 %v625_v4, %v624_v2 }
 0x458   :  { %v620_v8 = vadd.f32 %v619_v5, %v618_v3  ;;  %v627_v9 = vrot.slane %v626_v6, 1 }
 0x45a   :  { %v621_v10 = vmul.f32 0.125, %v620_v8  ;;  %v628_v11 = vadd.f32 %v627_v9, %v626_v6 }
 0x45c   :  { %v629_v12 = vmul.f32 0.125, %v628_v11  ;;  %v630_v13 = vmul.f32 %v621_v10, %v621_v10 }
 0x45e   :  { %v631_v14 = vsub.f32 %v629_v12, %v630_v13 }
 0x460   :  { %v632_v15 = vmax.f32 %v631_v14, 0.0 }
 0x462   :  { %v633_v16 = vadd.f32 1e-05, %v632_v15 }
 0x464   :  { %2332 = vrsqrt.f32 %v633_v16 }
 0x46e   :  { %v2333_v17 = vpop.eup %2332 }
 0x46f   :  { %v635_v18 = vmul.f32 %v2333_v17, %v2593_v33 }
 0x471   :  { %v636_v19 = vmul.f32 %v635_v18, %v621_v10  ;;  %v644_v24 = vrot.slane %v635_v18, %v2545_v56 }
 0x473   :  { %v638_v23 = vrot.slane %v636_v19, 7  ;;  %v645_v26 = vmul.f32 %v644_v24, %v614_v58 }
 0x475   :  { %v640_v25 = vsub.f32 %v2593_v33, %v638_v23 }
 0x477   :  { %v649_v27 = vrot.slane %v640_v25, %v2560_v7 }
 0x479   :  { %v650_v28 = vadd.f32 %v649_v27, %v645_v26 }
 0x47b   :  { %v668_v29 = vpack.c.bf16 %v650_v28, %v650_v28  ;;  %v2285_v28 = vld [vmem:[#allocation5 + $0x1b8] sm:$0xff]  }
 0x47d   :  { %2077 = vmatmul.mubr.bf16.vlgmr.msra.gmra.mrb[8].mxu0 %v668_v29  ;;  %v820_v29 = vrot.slane %v2593_v33, %v2591_v31 }
 0x47e   :  { %2116 = vmatprep.mubr.msk.bf16.mxu0 %vm2448_vm0, %v2447_v0  ;;  %2101 = vmatpush3.bf16.msra.mxu0 %v2278_v41  ;;  %v2288_v41 = vld [vmem:[#allocation5 + $0x1d0] sm:$0xff]  }
 0x47f   :  { %2102 = vmatprep.subr.bf16.mxu0 %v2447_v0 }
 0x482   :  { %2103 = vmatpush3.bf16.msra.mxu0 %v2279_v22  ;;  %v2290_v22 = vld [vmem:[#allocation5 + $0x1e0] sm:$0xff]  }
 0x483   :  { %2104 = vmatprep.subr.bf16.mxu0 %v2447_v0 }
 0x486   :  { %2105 = vmatpush3.bf16.msra.mxu0 %v2280_v20  ;;  %v2291_v20 = vld [vmem:[#allocation5 + $0x1e8] sm:$0xff]  }
 0x487   :  { %2106 = vmatprep.subr.bf16.mxu0 %v2447_v0 }
 0x48a   :  { %2107 = vmatpush3.bf16.msra.mxu0 %v2281_v42  ;;  %v2292_v42 = vld [vmem:[#allocation5 + $0x1f0] sm:$0xff]  }
 0x48b   :  { %2108 = vmatprep.subr.bf16.mxu0 %v2447_v0 }
 0x48e   :  { %2109 = vmatpush3.bf16.msra.mxu0 %v2282_v43  ;;  %v2293_v43 = vld [vmem:[#allocation5 + $0x1f8] sm:$0xff]  }
 0x48f   :  { %2110 = vmatprep.subr.bf16.mxu0 %v2447_v0 }
 0x492   :  { %2111 = vmatpush3.bf16.msra.mxu0 %v2283_v45  ;;  %v2652_v45 = vld [vmem:[#allocation7 + $0x10] sm:$0xff] }
 0x493   :  { %2112 = vmatprep.subr.bf16.mxu0 %v2447_v0 }
 0x496   :  { %2113 = vmatpush3.bf16.msra.mxu0 %v2284_v46  ;;  %v930_v46 = vrot.slane %v2652_v45, %v2533_v21 }
 0x497   :  { %2114 = vmatprep.subr.bf16.mxu0 %v2447_v0 }
 0x49a   :  { %2115 = vmatpush3.bf16.msra.mxu0 %v2285_v28  ;;  %v2295_v28 = vld [vmem:[#allocation5 + $0x208] sm:$0xff]  }
 0x49b   :  { %2140 = vmatprep.subr.bf16.mxu0 %v2447_v0 }
 0x550   :  { %v755_v48 = vpop.f32.mrb[8].mxu0 }
 0x551   :  { %v756_v49 = vadd.f32 %v755_v48, %v672_v47  ;;  %v2078_v50 = vpop.f32.mrb[9].mxu0 }
 0x552   :  { %v758_v51 = vpop.f32.mrb[10].mxu0 }
 0x553   :  { %v761_v53 = vmul.f32 0.2, %v756_v49  ;;  %v2079_v54 = vpop.f32.mrb[11].mxu0 }
 0x555   :  { %v762_v55 = vmax.f32 %v756_v49, %v761_v53 }
 0x557   :  { %v763_v57 = vrot.slane %v762_v55, 4  ;;  %v770_v58 = vmul.f32 %v762_v55, %v762_v55 }
 0x559   :  { %v764_v59 = vadd.f32 %v763_v57, %v762_v55  ;;  %v771_v61 = vrot.slane %v770_v58, 4 }
 0x55b   :  { %v765_v62 = vrot.slane %v764_v59, 2  ;;  %v772_v63 = vadd.f32 %v771_v61, %v770_v58 }
 0x55d   :  { %v766_v1 = vadd.f32 %v765_v62, %v764_v59  ;;  %v773_v2 = vrot.slane %v772_v63, 2 }
 0x55f   :  { %v767_v3 = vrot.slane %v766_v1, 1  ;;  %v774_v4 = vadd.f32 %v773_v2, %v772_v63 }
 0x561   :  { %v768_v5 = vadd.f32 %v767_v3, %v766_v1  ;;  %v775_v6 = vrot.slane %v774_v4, 1 }
 0x563   :  { %v769_v8 = vmul.f32 0.125, %v768_v5  ;;  %v776_v9 = vadd.f32 %v775_v6, %v774_v4 }
 0x565   :  { %v777_v10 = vmul.f32 0.125, %v776_v9  ;;  %v778_v11 = vmul.f32 %v769_v8, %v769_v8 }
 0x567   :  { %v779_v12 = vsub.f32 %v777_v10, %v778_v11 }
 0x569   :  { %v780_v13 = vmax.f32 %v779_v12, 0.0 }
 0x56b   :  { %v781_v14 = vadd.f32 1e-05, %v780_v13 }
 0x56d   :  { %2334 = vrsqrt.f32 %v781_v14 }
 0x577   :  { %v2335_v15 = vpop.eup %2334 }
 0x578   :  { %v783_v16 = vmul.f32 %v2335_v15, %v2593_v33 }
 0x57a   :  { %v784_v17 = vmul.f32 %v783_v16, %v769_v8  ;;  %v792_v19 = vrot.slane %v783_v16, %v2570_v44 }
 0x57c   :  { %v786_v18 = vrot.slane %v784_v17, 7  ;;  %v793_v24 = vmul.f32 %v792_v19, %v762_v55 }
 0x57e   :  { %v788_v23 = vsub.f32 %v2593_v33, %v786_v18  ;;  %v2289_v33 = vld [vmem:[#allocation5 + $0x1d8] sm:$0xff]  }
 0x580   :  { %v797_v25 = vrot.slane %v788_v23, %v2585_v60 }
 0x582   :  { %v798_v26 = vadd.f32 %v797_v25, %v793_v24 }
 0x584   :  { %v816_v27 = vpack.c.bf16 %v798_v26, %v798_v26 }
 0x586   :  { %2097 = vmatmul.mubr.bf16.vlgmr.msra.gmra.mrb[8].mxu1 %v816_v27  ;;  %v2294_v27 = vld [vmem:[#allocation5 + $0x200] sm:$0xff]  }
 0x587   :  { %2136 = vmatprep.mubr.msk.bf16.mxu1 %vm2448_vm0, %v2447_v0  ;;  %2121 = vmatpush3.bf16.msra.mxu1 %v2286_v38 }
 0x588   :  { %2122 = vmatprep.subr.bf16.mxu1 %v2447_v0 }
 0x58b   :  { %2123 = vmatpush3.bf16.msra.mxu1 %v2287_v39 }
 0x58c   :  { %2124 = vmatprep.subr.bf16.mxu1 %v2447_v0 }
 0x58f   :  { %2125 = vmatpush3.bf16.msra.mxu1 %v2288_v41 }
 0x590   :  { %2126 = vmatprep.subr.bf16.mxu1 %v2447_v0 }
 0x593   :  { %2127 = vmatpush3.bf16.msra.mxu1 %v2289_v33 }
 0x594   :  { %2128 = vmatprep.subr.bf16.mxu1 %v2447_v0 }
 0x597   :  { %2129 = vmatpush3.bf16.msra.mxu1 %v2290_v22 }
 0x598   :  { %2130 = vmatprep.subr.bf16.mxu1 %v2447_v0 }
 0x59b   :  { %2131 = vmatpush3.bf16.msra.mxu1 %v2291_v20 }
 0x59c   :  { %2132 = vmatprep.subr.bf16.mxu1 %v2447_v0 }
 0x59f   :  { %2133 = vmatpush3.bf16.msra.mxu1 %v2292_v42 }
 0x5a0   :  { %2134 = vmatprep.subr.bf16.mxu1 %v2447_v0 }
 0x5a3   :  { %2135 = vmatpush3.bf16.msra.mxu1 %v2293_v43 }
 0x5a4   :  { %2160 = vmatprep.subr.bf16.mxu1 %v2447_v0 }
 0x659   :  { %v903_v30 = vpop.f32.mrb[8].mxu1 }
 0x65a   :  { %v904_v32 = vadd.f32 %v903_v30, %v820_v29  ;;  %v2098_v34 = vpop.f32.mrb[9].mxu1  ;;  %v2296_v29 = vld [vmem:[#allocation5 + $0x210] sm:$0xff]   ;;  %v2297_v30 = vld [vmem:[#allocation5 + $0x218] sm:$0xff]  }
 0x65b   :  { %v906_v35 = vpop.f32.mrb[10].mxu1  ;;  %v2299_v34 = vld [vmem:[#allocation5 + $0x228] sm:$0xff]  }
 0x65c   :  { %v926_v36 = vpack.c.bf16 %v904_v32, %v904_v32  ;;  %v2099_v37 = vpop.f32.mrb[11].mxu1  ;;  %v2298_v32 = vld [vmem:[#allocation5 + $0x220] sm:$0xff]   ;;  %v2300_v35 = vld [vmem:[#allocation5 + $0x230] sm:$0xff]  }
 0x65d   :  { %v1078_v37 = vrot.slane %v2652_v45, %v2560_v7 }
 0x65e   :  { %2117 = vmatmul.mubr.bf16.vlgmr.msra.gmra.mrb[12].mxu0 %v926_v36  ;;  %v2301_v36 = vld [vmem:[#allocation5 + $0x238] sm:$0xff]  }
 0x65f   :  { %2156 = vmatprep.mubr.msk.bf16.mxu0 %vm2448_vm0, %v2447_v0  ;;  %2141 = vmatpush3.bf16.msra.mxu0 %v2294_v27 }
 0x660   :  { %2142 = vmatprep.subr.bf16.mxu0 %v2447_v0 }
 0x663   :  { %2143 = vmatpush3.bf16.msra.mxu0 %v2295_v28 }
 0x664   :  { %2144 = vmatprep.subr.bf16.mxu0 %v2447_v0 }
 0x667   :  { %2145 = vmatpush3.bf16.msra.mxu0 %v2296_v29 }
 0x668   :  { %2146 = vmatprep.subr.bf16.mxu0 %v2447_v0 }
 0x66b   :  { %2147 = vmatpush3.bf16.msra.mxu0 %v2297_v30 }
 0x66c   :  { %2148 = vmatprep.subr.bf16.mxu0 %v2447_v0 }
 0x66f   :  { %2149 = vmatpush3.bf16.msra.mxu0 %v2298_v32 }
 0x670   :  { %2150 = vmatprep.subr.bf16.mxu0 %v2447_v0 }
 0x673   :  { %2151 = vmatpush3.bf16.msra.mxu0 %v2299_v34 }
 0x674   :  { %2152 = vmatprep.subr.bf16.mxu0 %v2447_v0 }
 0x677   :  { %2153 = vmatpush3.bf16.msra.mxu0 %v2300_v35 }
 0x678   :  { %2154 = vmatprep.subr.bf16.mxu0 %v2447_v0 }
 0x67b   :  { %2155 = vmatpush3.bf16.msra.mxu0 %v2301_v36 }
 0x67c   :  { %2180 = vmatprep.subr.bf16.mxu0 %v2447_v0 }
 0x731   :  { %v1013_v47 = vpop.f32.mrb[12].mxu0 }
 0x732   :  { %v1014_v48 = vadd.f32 %v1013_v47, %v930_v46  ;;  %v2118_v49 = vpop.f32.mrb[13].mxu0 }
 0x733   :  { %v1016_v50 = vpop.f32.mrb[14].mxu0 }
 0x734   :  { %v1019_v51 = vmul.f32 0.2, %v1014_v48  ;;  %v2119_v53 = vpop.f32.mrb[15].mxu0 }
 0x736   :  { %v1020_v54 = vmax.f32 %v1014_v48, %v1019_v51 }
 0x738   :  { %v1021_v55 = vrot.slane %v1020_v54, 4  ;;  %v1028_v57 = vmul.f32 %v1020_v54, %v1020_v54 }
 0x73a   :  { %v1022_v58 = vadd.f32 %v1021_v55, %v1020_v54  ;;  %v1029_v59 = vrot.slane %v1028_v57, 4 }
 0x73c   :  { %v1023_v61 = vrot.slane %v1022_v58, 2  ;;  %v1030_v62 = vadd.f32 %v1029_v59, %v1028_v57 }
 0x73e   :  { %v1024_v63 = vadd.f32 %v1023_v61, %v1022_v58  ;;  %v1031_v1 = vrot.slane %v1030_v62, 2 }
 0x740   :  { %v1025_v2 = vrot.slane %v1024_v63, 1  ;;  %v1032_v3 = vadd.f32 %v1031_v1, %v1030_v62 }
 0x742   :  { %v1026_v4 = vadd.f32 %v1025_v2, %v1024_v63  ;;  %v1033_v5 = vrot.slane %v1032_v3, 1 }
 0x744   :  { %v1027_v6 = vmul.f32 0.125, %v1026_v4  ;;  %v1034_v8 = vadd.f32 %v1033_v5, %v1032_v3 }
 0x746   :  { %v1035_v9 = vmul.f32 0.125, %v1034_v8  ;;  %v1036_v10 = vmul.f32 %v1027_v6, %v1027_v6 }
 0x748   :  { %v1037_v11 = vsub.f32 %v1035_v9, %v1036_v10 }
 0x74a   :  { %v1038_v12 = vmax.f32 %v1037_v11, 0.0 }
 0x74c   :  { %v1039_v13 = vadd.f32 1e-05, %v1038_v12 }
 0x74e   :  { %2336 = vrsqrt.f32 %v1039_v13 }
 0x758   :  { %v2337_v14 = vpop.eup %2336 }
 0x759   :  { %v1041_v15 = vmul.f32 %v2337_v14, %v2652_v45 }
 0x75b   :  { %v1042_v16 = vmul.f32 %v1041_v15, %v1027_v6  ;;  %v1050_v18 = vrot.slane %v1041_v15, %v2541_v52  ;;  %v2302_v15 = vld [vmem:[#allocation5 + $0x240] sm:$0xff]  }
 0x75d   :  { %v1044_v17 = vrot.slane %v1042_v16, 7  ;;  %v1051_v23 = vmul.f32 %v1050_v18, %v1020_v54  ;;  %v2303_v16 = vld [vmem:[#allocation5 + $0x248] sm:$0xff]   ;;  %v2305_v18 = vld [vmem:[#allocation5 + $0x258] sm:$0xff]  }
 0x75f   :  { %v1046_v19 = vsub.f32 %v2652_v45, %v1044_v17  ;;  %v2304_v17 = vld [vmem:[#allocation5 + $0x250] sm:$0xff]  }
 0x761   :  { %v1055_v24 = vrot.slane %v1046_v19, %v2545_v56  ;;  %v2306_v19 = vld [vmem:[#allocation5 + $0x260] sm:$0xff]  }
 0x763   :  { %v1056_v25 = vadd.f32 %v1055_v24, %v1051_v23  ;;  %v2307_v23 = vld [vmem:[#allocation5 + $0x268] sm:$0xff]   ;;  %v2308_v24 = vld [vmem:[#allocation5 + $0x270] sm:$0xff]  }
 0x765   :  { %v1074_v26 = vpack.c.bf16 %v1056_v25, %v1056_v25  ;;  %v2309_v25 = vld [vmem:[#allocation5 + $0x278] sm:$0xff]  }
 0x767   :  { %2137 = vmatmul.mubr.bf16.vlgmr.msra.gmra.mrb[12].mxu1 %v1074_v26  ;;  %v1226_v26 = vrot.slane %v2652_v45, %v2585_v60 }
 0x768   :  { %2176 = vmatprep.mubr.msk.bf16.mxu1 %vm2448_vm0, %v2447_v0  ;;  %2161 = vmatpush3.bf16.msra.mxu1 %v2302_v15 }
 0x769   :  { %2162 = vmatprep.subr.bf16.mxu1 %v2447_v0 }
 0x76c   :  { %2163 = vmatpush3.bf16.msra.mxu1 %v2303_v16 }
 0x76d   :  { %2164 = vmatprep.subr.bf16.mxu1 %v2447_v0 }
 0x770   :  { %2165 = vmatpush3.bf16.msra.mxu1 %v2304_v17 }
 0x771   :  { %2166 = vmatprep.subr.bf16.mxu1 %v2447_v0 }
 0x774   :  { %2167 = vmatpush3.bf16.msra.mxu1 %v2305_v18 }
 0x775   :  { %2168 = vmatprep.subr.bf16.mxu1 %v2447_v0 }
 0x778   :  { %2169 = vmatpush3.bf16.msra.mxu1 %v2306_v19 }
 0x779   :  { %2170 = vmatprep.subr.bf16.mxu1 %v2447_v0 }
 0x77c   :  { %2171 = vmatpush3.bf16.msra.mxu1 %v2307_v23 }
 0x77d   :  { %2172 = vmatprep.subr.bf16.mxu1 %v2447_v0 }
 0x780   :  { %2173 = vmatpush3.bf16.msra.mxu1 %v2308_v24 }
 0x781   :  { %2174 = vmatprep.subr.bf16.mxu1 %v2447_v0 }
 0x784   :  { %2175 = vmatpush3.bf16.msra.mxu1 %v2309_v25 }
 0x785   :  { %2200 = vmatprep.subr.bf16.mxu1 %v2447_v0 }
 0x83a   :  { %v1161_v38 = vpop.f32.mrb[12].mxu1 }
 0x83b   :  { %v1162_v39 = vadd.f32 %v1161_v38, %v1078_v37  ;;  %v2138_v41 = vpop.f32.mrb[13].mxu1 }
 0x83c   :  { %v1164_v33 = vpop.f32.mrb[14].mxu1 }
 0x83d   :  { %v1167_v22 = vmul.f32 0.2, %v1162_v39  ;;  %v2139_v20 = vpop.f32.mrb[15].mxu1 }
 0x83f   :  { %v1168_v42 = vmax.f32 %v1162_v39, %v1167_v22 }
 0x841   :  { %v1169_v43 = vrot.slane %v1168_v42, 4  ;;  %v1176_v46 = vmul.f32 %v1168_v42, %v1168_v42 }
 0x843   :  { %v1170_v47 = vadd.f32 %v1169_v43, %v1168_v42  ;;  %v1177_v48 = vrot.slane %v1176_v46, 4 }
 0x845   :  { %v1171_v49 = vrot.slane %v1170_v47, 2  ;;  %v1178_v50 = vadd.f32 %v1177_v48, %v1176_v46 }
 0x847   :  { %v1172_v51 = vadd.f32 %v1171_v49, %v1170_v47  ;;  %v1179_v53 = vrot.slane %v1178_v50, 2 }
 0x849   :  { %v1173_v54 = vrot.slane %v1172_v51, 1  ;;  %v1180_v55 = vadd.f32 %v1179_v53, %v1178_v50 }
 0x84b   :  { %v1174_v57 = vadd.f32 %v1173_v54, %v1172_v51  ;;  %v1181_v58 = vrot.slane %v1180_v55, 1 }
 0x84d   :  { %v1175_v59 = vmul.f32 0.125, %v1174_v57  ;;  %v1182_v61 = vadd.f32 %v1181_v58, %v1180_v55 }
 0x84f   :  { %v1183_v62 = vmul.f32 0.125, %v1182_v61  ;;  %v1184_v63 = vmul.f32 %v1175_v59, %v1175_v59  ;;  %v2689_v61 = vld [vmem:[#allocation7 + $0x18] sm:$0xff] }
 0x851   :  { %v1185_v1 = vsub.f32 %v1183_v62, %v1184_v63 }
 0x853   :  { %v1186_v2 = vmax.f32 %v1185_v1, 0.0 }
 0x855   :  { %v1187_v3 = vadd.f32 1e-05, %v1186_v2 }
 0x857   :  { %2338 = vrsqrt.f32 %v1187_v3 }
 0x861   :  { %v2339_v4 = vpop.eup %2338 }
 0x862   :  { %v1189_v5 = vmul.f32 %v2339_v4, %v2652_v45 }
 0x864   :  { %v1190_v6 = vmul.f32 %v1189_v5, %v1175_v59  ;;  %v1198_v9 = vrot.slane %v1189_v5, %v2566_v40 }
 0x866   :  { %v1192_v8 = vrot.slane %v1190_v6, 7  ;;  %v1199_v11 = vmul.f32 %v1198_v9, %v1168_v42  ;;  %v2310_v6 = vld [vmem:[#allocation5 + $0x280] sm:$0xff]   ;;  %v2313_v9 = vld [vmem:[#allocation5 + $0x298] sm:$0xff]  }
 0x868   :  { %v1194_v10 = vsub.f32 %v2652_v45, %v1192_v8  ;;  %v2312_v8 = vld [vmem:[#allocation5 + $0x290] sm:$0xff]  }
 0x86a   :  { %v1203_v12 = vrot.slane %v1194_v10, %v2570_v44  ;;  %v2315_v10 = vld [vmem:[#allocation5 + $0x2a8] sm:$0xff]  }
 0x86c   :  { %v1204_v13 = vadd.f32 %v1203_v12, %v1199_v11  ;;  %v2316_v11 = vld [vmem:[#allocation5 + $0x2b0] sm:$0xff]   ;;  %v2317_v12 = vld [vmem:[#allocation5 + $0x2b8] sm:$0xff]  }
 0x86e   :  { %v1222_v14 = vpack.c.bf16 %v1204_v13, %v1204_v13  ;;  %v1374_v13 = vrot.slane %v2689_v61, %v2541_v52 }
 0x870   :  { %2157 = vmatmul.mubr.bf16.vlgmr.msra.gmra.mrb[16].mxu0 %v1222_v14 }
 0x871   :  { %2196 = vmatprep.mubr.msk.bf16.mxu0 %vm2448_vm0, %v2447_v0  ;;  %2181 = vmatpush3.bf16.msra.mxu0 %v2310_v6 }
 0x872   :  { %2182 = vmatprep.subr.bf16.mxu0 %v2447_v0 }
 0x943   :  { %v1309_v27 = vpop.f32.mrb[16].mxu0 }
 0x944   :  { %v1310_v28 = vadd.f32 %v1309_v27, %v1226_v26  ;;  %v2158_v29 = vpop.f32.mrb[17].mxu0 }
 0x945   :  { %v1312_v30 = vpop.f32.mrb[18].mxu0 }
 0x946   :  { %v1315_v32 = vmul.f32 0.2, %v1310_v28  ;;  %v2159_v34 = vpop.f32.mrb[19].mxu0 }
 0x948   :  { %v1316_v35 = vmax.f32 %v1310_v28, %v1315_v32 }
 0x94a   :  { %v1317_v36 = vrot.slane %v1316_v35, 4  ;;  %v1324_v37 = vmul.f32 %v1316_v35, %v1316_v35 }
 0x94c   :  { %v1318_v38 = vadd.f32 %v1317_v36, %v1316_v35  ;;  %v1325_v39 = vrot.slane %v1324_v37, 4 }
 0x94e   :  { %v1319_v41 = vrot.slane %v1318_v38, 2  ;;  %v1326_v33 = vadd.f32 %v1325_v39, %v1324_v37 }
 0x950   :  { %v1320_v22 = vadd.f32 %v1319_v41, %v1318_v38  ;;  %v1327_v20 = vrot.slane %v1326_v33, 2 }
 0x952   :  { %v1321_v42 = vrot.slane %v1320_v22, 1  ;;  %v1328_v43 = vadd.f32 %v1327_v20, %v1326_v33 }
 0x954   :  { %v1322_v46 = vadd.f32 %v1321_v42, %v1320_v22  ;;  %v1329_v47 = vrot.slane %v1328_v43, 1 }
 0x956   :  { %v1323_v48 = vmul.f32 0.125, %v1322_v46  ;;  %v1330_v49 = vadd.f32 %v1329_v47, %v1328_v43 }
 0x958   :  { %v1331_v50 = vmul.f32 0.125, %v1330_v49  ;;  %v1332_v51 = vmul.f32 %v1323_v48, %v1323_v48 }
 0x95a   :  { %v1333_v53 = vsub.f32 %v1331_v50, %v1332_v51 }
 0x95c   :  { %v1334_v54 = vmax.f32 %v1333_v53, 0.0 }
 0x95e   :  { %v1335_v55 = vadd.f32 1e-05, %v1334_v54 }
 0x960   :  { %2340 = vrsqrt.f32 %v1335_v55  ;;  %v2318_v55 = vld [vmem:[#allocation5 + $0x2c0] sm:$0xff]  }
 0x96a   :  { %v2341_v57 = vpop.eup %2340 }
 0x96b   :  { %v1337_v58 = vmul.f32 %v2341_v57, %v2652_v45  ;;  %v2311_v45 = vld [vmem:[#allocation5 + $0x288] sm:$0xff]  }
 0x96c   :  { %2183 = vmatpush3.bf16.msra.mxu0 %v2311_v45  ;;  %v2319_v57 = vld [vmem:[#allocation5 + $0x2c8] sm:$0xff]  }
 0x96d   :  { %v1338_v59 = vmul.f32 %v1337_v58, %v1323_v48  ;;  %v1346_v63 = vrot.slane %v1337_v58, %v2591_v31  ;;  %2184 = vmatprep.subr.bf16.mxu0 %v2447_v0  ;;  %v2320_v58 = vld [vmem:[#allocation5 + $0x2d0] sm:$0xff]  }
 0x96f   :  { %v1340_v62 = vrot.slane %v1338_v59, 7  ;;  %v1347_v2 = vmul.f32 %v1346_v63, %v1316_v35  ;;  %v2321_v59 = vld [vmem:[#allocation5 + $0x2d8] sm:$0xff]  }
 0x970   :  { %2185 = vmatpush3.bf16.msra.mxu0 %v2312_v8  ;;  %v2325_v63 = vld [vmem:[#allocation5 + $0x2f8] sm:$0xff]  }
 0x971   :  { %v1342_v1 = vsub.f32 %v2689_v61, %v1340_v62  ;;  %2186 = vmatprep.subr.bf16.mxu0 %v2447_v0  ;;  %v2324_v62 = vld [vmem:[#allocation5 + $0x2f0] sm:$0xff]  }
 0x973   :  { %v1351_v3 = vrot.slane %v1342_v1, %v2533_v21  ;;  %v2314_v21 = vld [vmem:[#allocation5 + $0x2a0] sm:$0xff]   ;;  %v1522_v1 = vrot.slane %v2689_v61, %v2566_v40 }
 0x974   :  { %2187 = vmatpush3.bf16.msra.mxu0 %v2313_v9 }
 0x975   :  { %v1352_v4 = vadd.f32 %v1351_v3, %v1347_v2  ;;  %2188 = vmatprep.subr.bf16.mxu0 %v2447_v0 }
 0x977   :  { %v1370_v5 = vpack.c.bf16 %v1352_v4, %v1352_v4 }
 0x978   :  { %2189 = vmatpush3.bf16.msra.mxu0 %v2314_v21 }
 0x979   :  { %2177 = vmatmul.mubr.bf16.vlgmr.msra.gmra.mrb[16].mxu1 %v1370_v5  ;;  %2190 = vmatprep.subr.bf16.mxu0 %v2447_v0 }
 0x97a   :  { %2216 = vmatprep.mubr.msk.bf16.mxu1 %vm2448_vm0, %v2447_v0  ;;  %2201 = vmatpush3.bf16.msra.mxu1 %v2318_v55 }
 0x97b   :  { %2202 = vmatprep.subr.bf16.mxu1 %v2447_v0 }
 0x97c   :  { %2191 = vmatpush3.bf16.msra.mxu0 %v2315_v10 }
 0x97d   :  { %2192 = vmatprep.subr.bf16.mxu0 %v2447_v0 }
 0x97e   :  { %2203 = vmatpush3.bf16.msra.mxu1 %v2319_v57 }
 0x97f   :  { %2204 = vmatprep.subr.bf16.mxu1 %v2447_v0 }
 0x980   :  { %2193 = vmatpush3.bf16.msra.mxu0 %v2316_v11 }
 0x981   :  { %2194 = vmatprep.subr.bf16.mxu0 %v2447_v0 }
 0x982   :  { %2205 = vmatpush3.bf16.msra.mxu1 %v2320_v58 }
 0x983   :  { %2206 = vmatprep.subr.bf16.mxu1 %v2447_v0 }
 0x984   :  { %2195 = vmatpush3.bf16.msra.mxu0 %v2317_v12 }
 0x986   :  { %2207 = vmatpush3.bf16.msra.mxu1 %v2321_v59 }
 0x987   :  { %2208 = vmatprep.subr.bf16.mxu1 %v2447_v0 }
 0xa4c   :  { %v1457_v14 = vpop.f32.mrb[16].mxu1 }
 0xa4d   :  { %v1458_v15 = vadd.f32 %v1457_v14, %v1374_v13  ;;  %v2178_v16 = vpop.f32.mrb[17].mxu1 }
 0xa4e   :  { %v1460_v17 = vpop.f32.mrb[18].mxu1 }
 0xa4f   :  { %v1463_v18 = vmul.f32 0.2, %v1458_v15  ;;  %v2179_v19 = vpop.f32.mrb[19].mxu1 }
 0xa51   :  { %v1464_v23 = vmax.f32 %v1458_v15, %v1463_v18 }
 0xa53   :  { %v1465_v24 = vrot.slane %v1464_v23, 4  ;;  %v1472_v25 = vmul.f32 %v1464_v23, %v1464_v23 }
 0xa55   :  { %v1466_v26 = vadd.f32 %v1465_v24, %v1464_v23  ;;  %v1473_v27 = vrot.slane %v1472_v25, 4 }
 0xa57   :  { %v1467_v28 = vrot.slane %v1466_v26, 2  ;;  %v1474_v29 = vadd.f32 %v1473_v27, %v1472_v25 }
 0xa59   :  { %v1468_v30 = vadd.f32 %v1467_v28, %v1466_v26  ;;  %v1475_v32 = vrot.slane %v1474_v29, 2 }
 0xa5b   :  { %v1469_v34 = vrot.slane %v1468_v30, 1  ;;  %v1476_v35 = vadd.f32 %v1475_v32, %v1474_v29 }
 0xa5d   :  { %v1470_v36 = vadd.f32 %v1469_v34, %v1468_v30  ;;  %v1477_v37 = vrot.slane %v1476_v35, 1 }
 0xa5f   :  { %v1471_v52 = vmul.f32 0.125, %v1470_v36  ;;  %v1478_v38 = vadd.f32 %v1477_v37, %v1476_v35 }
 0xa61   :  { %v1479_v39 = vmul.f32 0.125, %v1478_v38  ;;  %v1480_v41 = vmul.f32 %v1471_v52, %v1471_v52 }
 0xa63   :  { %v1481_v33 = vsub.f32 %v1479_v39, %v1480_v41  ;;  %v1670_v39 = vrot.slane %v2689_v61, %v2591_v31 }
 0xa65   :  { %v1482_v22 = vmax.f32 %v1481_v33, 0.0 }
 0xa67   :  { %v1483_v20 = vadd.f32 1e-05, %v1482_v22 }
 0xa69   :  { %2342 = vrsqrt.f32 %v1483_v20 }
 0xa73   :  { %v2343_v42 = vpop.eup %2342 }
 0xa74   :  { %v1485_v43 = vmul.f32 %v2343_v42, %v2689_v61 }
 0xa76   :  { %v1486_v46 = vmul.f32 %v1485_v43, %v1471_v52  ;;  %v1494_v48 = vrot.slane %v1485_v43, %v2545_v56  ;;  %v2322_v56 = vld [vmem:[#allocation5 + $0x2e0] sm:$0xff]  }
 0xa77   :  { %2209 = vmatpush3.bf16.msra.mxu1 %v2322_v56 }
 0xa78   :  { %v1488_v47 = vrot.slane %v1486_v46, 7  ;;  %v1495_v50 = vmul.f32 %v1494_v48, %v1464_v23  ;;  %2210 = vmatprep.subr.bf16.mxu1 %v2447_v0 }
 0xa7a   :  { %v1490_v49 = vsub.f32 %v2689_v61, %v1488_v47 }
 0xa7c   :  { %v1499_v51 = vrot.slane %v1490_v49, %v2560_v7  ;;  %v2323_v7 = vld [vmem:[#allocation5 + $0x2e8] sm:$0xff]  }
 0xa7d   :  { %2211 = vmatpush3.bf16.msra.mxu1 %v2323_v7 }
 0xa7e   :  { %v1500_v53 = vadd.f32 %v1499_v51, %v1495_v50  ;;  %2212 = vmatprep.subr.bf16.mxu1 %v2447_v0 }
 0xa80   :  { %v1518_v54 = vpack.c.bf16 %v1500_v53, %v1500_v53 }
 0xa81   :  { %2213 = vmatpush3.bf16.msra.mxu1 %v2324_v62 }
 0xa82   :  { %2197 = vmatmul.mubr.bf16.vlgmr.msra.gmra.mrb[20].mxu0 %v1518_v54  ;;  %2214 = vmatprep.subr.bf16.mxu1 %v2447_v0 }
 0xa85   :  { %2215 = vmatpush3.bf16.msra.mxu1 %v2325_v63 }
 0xb55   :  { %v1605_v2 = vpop.f32.mrb[20].mxu0 }
 0xb56   :  { %v1606_v3 = vadd.f32 %v1605_v2, %v1522_v1  ;;  %v2198_v4 = vpop.f32.mrb[21].mxu0 }
 0xb57   :  { %v1608_v5 = vpop.f32.mrb[22].mxu0 }
 0xb58   :  { %v1611_v6 = vmul.f32 0.2, %v1606_v3  ;;  %v2199_v45 = vpop.f32.mrb[23].mxu0 }
 0xb5a   :  { %v1612_v8 = vmax.f32 %v1606_v3, %v1611_v6 }
 0xb5c   :  { %v1613_v9 = vrot.slane %v1612_v8, 4  ;;  %v1620_v21 = vmul.f32 %v1612_v8, %v1612_v8 }
 0xb5e   :  { %v1614_v10 = vadd.f32 %v1613_v9, %v1612_v8  ;;  %v1621_v11 = vrot.slane %v1620_v21, 4 }
 0xb60   :  { %v1615_v12 = vrot.slane %v1614_v10, 2  ;;  %v1622_v13 = vadd.f32 %v1621_v11, %v1620_v21 }
 0xb62   :  { %v1616_v14 = vadd.f32 %v1615_v12, %v1614_v10  ;;  %v1623_v15 = vrot.slane %v1622_v13, 2 }
 0xb64   :  { %v1617_v0 = vrot.slane %v1616_v14, 1  ;;  %v1624_v16 = vadd.f32 %v1623_v15, %v1622_v13 }
 0xb66   :  { %v1618_v17 = vadd.f32 %v1617_v0, %v1616_v14  ;;  %v1625_v18 = vrot.slane %v1624_v16, 1 }
 0xb68   :  { %v1619_v40 = vmul.f32 0.125, %v1618_v17  ;;  %v1626_v19 = vadd.f32 %v1625_v18, %v1624_v16 }
 0xb6a   :  { %v1627_v23 = vmul.f32 0.125, %v1626_v19  ;;  %v1628_v24 = vmul.f32 %v1619_v40, %v1619_v40 }
 0xb6c   :  { %v1629_v25 = vsub.f32 %v1627_v23, %v1628_v24 }
 0xb6e   :  { %v1630_v26 = vmax.f32 %v1629_v25, 0.0 }
 0xb70   :  { %v1631_v27 = vadd.f32 1e-05, %v1630_v26 }
 0xb72   :  { %2344 = vrsqrt.f32 %v1631_v27 }
 0xb7c   :  { %v2345_v28 = vpop.eup %2344 }
 0xb7d   :  { %v1633_v29 = vmul.f32 %v2345_v28, %v2689_v61 }
 0xb7f   :  { %v1634_v30 = vmul.f32 %v1633_v29, %v1619_v40  ;;  %v1642_v34 = vrot.slane %v1633_v29, %v2570_v44 }
 0xb81   :  { %v1636_v32 = vrot.slane %v1634_v30, 7  ;;  %v1643_v36 = vmul.f32 %v1642_v34, %v1612_v8 }
 0xb83   :  { %v1638_v35 = vsub.f32 %v2689_v61, %v1636_v32 }
 0xb85   :  { %v1647_v37 = vrot.slane %v1638_v35, %v2585_v60 }
 0xb87   :  { %v1648_v52 = vadd.f32 %v1647_v37, %v1643_v36 }
 0xb89   :  { %v1666_v38 = vpack.c.bf16 %v1648_v52, %v1648_v52 }
 0xb8b   :  { %2217 = vmatmul.mubr.bf16.vlgmr.msra.gmra.mrb[20].mxu1 %v1666_v38 }
 0xc5e   :  { %v1753_v41 = vpop.f32.mrb[20].mxu1 }
 0xc5f   :  { %v1754_v33 = vadd.f32 %v1753_v41, %v1670_v39  ;;  %v2218_v22 = vpop.f32.mrb[21].mxu1 }
 0xc60   :  { %v1756_v20 = vpop.f32.mrb[22].mxu1 }
 0xc61   :  { %1759 = vst [vmem:[#allocation8] sm:$0xff] %v1754_v33  ;;  %v2219_v44 = vpop.f32.mrb[23].mxu1 }
 0xc62   :  { %2423 = shalt.err (!%p2420_p0)
}
 0xc63   :  { %s2424_s27 = scalar_lea.hbm %s2739_s3, 128 }
 0xc64   :  { %p2425_p1 = scmp.ne.s32.totalorder %s2739_s3, %s2424_s27  ;;  %p2428_p2 = scmp.lt.u32.totalorder %s2424_s27, %s2739_s3 }
 0xc66   :  { %p2430_p3 = pnand %p2428_p2, %p2425_p1 }
 0xc68   :  { %2433 = shalt.err (!%p2430_p3)
}
 0xc69   :  { %1769 = dma.vmem_to_hbm [thread:$0]  %s1767_s23, 128, %s2739_s3, [#allocation4]  }
 0xc6a   :  { %2438 = dma.done.wait [#allocation4], 128  }
 0xc6b   :  { %2439 = vsyncadd [#allocation4], 4294967168 }
 0xc6c   :  { %1773 = vsyncpa [#allocation3], 1 }
 0xc6d   :  { %1774 = vsyncpa [#allocation6], 1 }
 0xc6e   :  { %1775 = vsyncpa [#allocation4], 1 }

</bundles_post_ra>
